<compile_context>
chip_gen: v6e
topology: v6e:2x2x1
jax: 0.10.0
libtpu: 0.0.40
codegen_flags: <defaults>
</compile_context>

<pallas_src>
import functools
import math

import jax
import jax.numpy as jnp
from jax import lax
from jax.experimental import pallas as pl
from jax.experimental.pallas import tpu as pltpu

SQRT1_2 = 0.7071067811865476
LANE = 128


def _gelu(x):
    # exact (erf) GELU — matches torch.nn.functional.gelu default
    return 0.5 * x * (1.0 + lax.erf(x * SQRT1_2))


# --------------------------- fused projection-head kernel ---------------------------

def _proj_head_kernel(x_ref, w1_ref, b1_ref, w2_ref, b2_ref, g_ref, bt_ref, tok_ref,
                      o_ref, *, sqrt_d, eps):
    x = x_ref[0]                                                     # [R, F]
    proj = jnp.dot(x, w1_ref[0], preferred_element_type=jnp.float32) + b1_ref[0]
    h = _gelu(proj)
    y = jnp.dot(h, w2_ref[0], preferred_element_type=jnp.float32) + b2_ref[0] + proj
    mean = jnp.mean(y, axis=-1, keepdims=True)
    var = jnp.mean((y - mean) ** 2, axis=-1, keepdims=True)
    y = (y - mean) * lax.rsqrt(var + eps) * g_ref[0] + bt_ref[0]
    # * sqrt(d_model), learnable pos-enc is identity (use_time=False), + modality token
    o_ref[0] = y * sqrt_d + tok_ref[0]


def pallas_projection_heads(x_stack, w1, b1, w2, b2, g, bt, tok, sqrt_d, eps=1e-5):
    # x_stack: [M, R, F] (M modalities stacked), stacked weights along axis 0.
    M, R, F = x_stack.shape
    D = w1.shape[-1]
    return pl.pallas_call(
        functools.partial(_proj_head_kernel, sqrt_d=sqrt_d, eps=eps),
        out_shape=jax.ShapeDtypeStruct((M, R, D), jnp.float32),
        grid=(M,),
        in_specs=[
            pl.BlockSpec((1, R, F), lambda m: (m, 0, 0)),
            pl.BlockSpec((1, F, D), lambda m: (m, 0, 0)),
            pl.BlockSpec((1, 1, D), lambda m: (m, 0, 0)),
            pl.BlockSpec((1, D, D), lambda m: (m, 0, 0)),
            pl.BlockSpec((1, 1, D), lambda m: (m, 0, 0)),
            pl.BlockSpec((1, 1, D), lambda m: (m, 0, 0)),
            pl.BlockSpec((1, 1, D), lambda m: (m, 0, 0)),
            pl.BlockSpec((1, 1, D), lambda m: (m, 0, 0)),
        ],
        out_specs=pl.BlockSpec((1, R, D), lambda m: (m, 0, 0)),
        compiler_params=pltpu.CompilerParams(dimension_semantics=("arbitrary",)),
    )(x_stack, w1, b1, w2, b2, g, bt, tok)


# ------------------- fused encoder layer + CLS classifier kernel -------------------

def _encoder_cls_kernel(x_ref, mask_ref, wqkv_ref, bqkv_ref, wo_ref, bo_ref,
                        w1_ref, b1_ref, w2_ref, b2_ref, wout_ref, bout_ref,
                        logits_ref, attn_ref, *, n_heads, scale):
    x = x_ref[0]                                                     # [L, d]
    L, d = x.shape
    Dh = d // n_heads
    mask = mask_ref[0]                                               # [1, L] additive

    # packed QKV projection: one [L,d] x [d,3d] matmul
    qkv = jnp.dot(x, wqkv_ref[...], preferred_element_type=jnp.float32) + bqkv_ref[...]
    q = qkv[:, 0 * d:1 * d]
    k = qkv[:, 1 * d:2 * d]
    v = qkv[:, 2 * d:3 * d]

    # all heads in this single grid step; accumulate the head-mean of the probs
    attn_sum = jnp.zeros((L, L), jnp.float32)
    ctx_parts = []
    for h in range(n_heads):
        sl = slice(h * Dh, (h + 1) * Dh)
        qh, kh, vh = q[:, sl], k[:, sl], v[:, sl]
        s = lax.dot_general(qh, kh, (((1,), (1,)), ((), ())),
                            preferred_element_type=jnp.float32) * scale + mask
        s = s - jnp.max(s, axis=-1, keepdims=True)
        e = jnp.exp(s)
        p = e / jnp.sum(e, axis=-1, keepdims=True)
        attn_sum = attn_sum + p
        ctx_parts.append(jnp.dot(p, vh, preferred_element_type=jnp.float32))
    attn_ref[0] = attn_sum * (1.0 / n_heads)
    ctx = jnp.concatenate(ctx_parts, axis=-1)                        # [L, d]

    # attention output projection; eval x2 + BatchNorm1 already folded into wo/bo
    src = jnp.dot(ctx, wo_ref[...], preferred_element_type=jnp.float32) + bo_ref[...]

    # FFN (no residual with the layer input — reference quirk); x2 + BN2 folded into w2/b2
    hidden = _gelu(jnp.dot(src, w1_ref[...], preferred_element_type=jnp.float32)
                   + b1_ref[...])
    out = jnp.dot(hidden, w2_ref[...], preferred_element_type=jnp.float32) + b2_ref[...]

    # output = gelu(out); dropout=identity; take CLS token; classifier (lane-dense padded N)
    cls = _gelu(out[0:1, :])                                         # [1, d]
    logits_ref[0] = (jnp.dot(cls, wout_ref[...], preferred_element_type=jnp.float32)
                     + bout_ref[...])


def pallas_encoder_and_head(x, add_mask, enc, n_heads):
    # x: [B, L, d]; add_mask: [B, 1, L] additive key mask
    B, L, d = x.shape
    Dh = d // n_heads
    scale = 1.0 / math.sqrt(Dh)
    dff = enc["w1"].shape[1]
    npad = enc["wout"].shape[1]

    def wspec(shape):
        nd = len(shape)
        return pl.BlockSpec(shape, lambda b: (0,) * nd)

    logits_pad, attn_mean = pl.pallas_call(
        functools.partial(_encoder_cls_kernel, n_heads=n_heads, scale=scale),
        out_shape=(jax.ShapeDtypeStruct((B, 1, npad), jnp.float32),
                   jax.ShapeDtypeStruct((B, L, L), jnp.float32)),
        grid=(B,),
        in_specs=[
            pl.BlockSpec((1, L, d), lambda b: (b, 0, 0)),
            pl.BlockSpec((1, 1, L), lambda b: (b, 0, 0)),
            wspec((d, 3 * d)), wspec((1, 3 * d)),
            wspec((d, d)), wspec((1, d)),
            wspec((d, dff)), wspec((1, dff)),
            wspec((dff, d)), wspec((1, d)),
            wspec((d, npad)), wspec((1, npad)),
        ],
        out_specs=(pl.BlockSpec((1, 1, npad), lambda b: (b, 0, 0)),
                   pl.BlockSpec((1, L, L), lambda b: (b, 0, 0))),
        compiler_params=pltpu.CompilerParams(
            # at tiny B splitting across cores is pure overhead; enable when B grows
            dimension_semantics=("parallel",) if B >= 8 else ("arbitrary",)),
    )(x, add_mask, enc["wqkv"], enc["bqkv"], enc["wo"], enc["bo"],
      enc["w1"], enc["b1"], enc["w2"], enc["b2"], enc["wout"], enc["bout"])
    return logits_pad[:, 0, :], attn_mean


# ----------------------------------- parameters -----------------------------------

def _init_linear(key, d_in, d_out, scale=0.05):
    w = jax.random.normal(key, (d_in, d_out), jnp.float32) * scale
    b = jnp.zeros((d_out,), jnp.float32)
    return w, b


def init_params(key, feat_dim, d_model, dff, num_classes):
    ks = jax.random.split(key, 20)
    p = {}
    # ProjectionHead (img)
    p["pi_w1"], p["pi_b1"] = _init_linear(ks[0], feat_dim, d_model)
    p["pi_w2"], p["pi_b2"] = _init_linear(ks[1], d_model, d_model)
    p["pi_ln_g"] = jnp.ones((d_model,), jnp.float32)
    p["pi_ln_b"] = jnp.zeros((d_model,), jnp.float32)
    # ProjectionHead (text)
    p["pt_w1"], p["pt_b1"] = _init_linear(ks[2], feat_dim, d_model)
    p["pt_w2"], p["pt_b2"] = _init_linear(ks[3], d_model, d_model)
    p["pt_ln_g"] = jnp.ones((d_model,), jnp.float32)
    p["pt_ln_b"] = jnp.zeros((d_model,), jnp.float32)
    # Self-attention (SelfAttention class not provided -> standard MHA assumed)
    p["wq"], p["bq"] = _init_linear(ks[4], d_model, d_model)
    p["wk"], p["bk"] = _init_linear(ks[5], d_model, d_model)
    p["wv"], p["bv"] = _init_linear(ks[6], d_model, d_model)
    p["wo"], p["bo"] = _init_linear(ks[7], d_model, d_model)
    # FFN
    p["ffn_w1"], p["ffn_b1"] = _init_linear(ks[8], d_model, dff)
    p["ffn_w2"], p["ffn_b2"] = _init_linear(ks[9], dff, d_model)
    # BatchNorm1d (eval mode: running statistics)
    for n in ("bn1", "bn2"):
        p[n + "_g"] = jnp.ones((d_model,), jnp.float32)
        p[n + "_b"] = jnp.zeros((d_model,), jnp.float32)
        p[n + "_rm"] = jnp.zeros((d_model,), jnp.float32)
        p[n + "_rv"] = jnp.ones((d_model,), jnp.float32)
    # learnable tokens (register_token / pe_time exist in the module but are unused here)
    p["cls_token"] = jax.random.normal(ks[10], (1, 1, d_model), jnp.float32) * 0.02
    p["img_token"] = jax.random.normal(ks[11], (1, 1, d_model), jnp.float32) * 0.02
    p["text_token"] = jax.random.normal(ks[12], (1, 1, d_model), jnp.float32) * 0.02
    # output layer
    p["out_w"], p["out_b"] = _init_linear(ks[13], d_model, num_classes)
    return p


def fold_params(p, eps=1e-5):
    """One-time host-side prep: pack QKV, fold eval BatchNorms (+x2) into Wo/W2,
    pad the classifier to a lane-dense width, stack the two projection heads."""
    d = p["wq"].shape[0]
    dff = p["ffn_w1"].shape[1]
    num_classes = p["out_b"].shape[0]

    wqkv = jnp.concatenate([p["wq"], p["wk"], p["wv"]], axis=1)           # [d, 3d]
    bqkv = jnp.concatenate([p["bq"], p["bk"], p["bv"]]).reshape(1, 3 * d)

    s1 = p["bn1_g"] / jnp.sqrt(p["bn1_rv"] + eps)
    t1 = p["bn1_b"] - p["bn1_rm"] * s1
    wo = p["wo"] * (2.0 * s1)[None, :]
    bo = (2.0 * s1 * p["bo"] + t1).reshape(1, d)

    s2 = p["bn2_g"] / jnp.sqrt(p["bn2_rv"] + eps)
    t2 = p["bn2_b"] - p["bn2_rm"] * s2
    w2 = p["ffn_w2"] * (2.0 * s2)[None, :]
    b2 = (2.0 * s2 * p["ffn_b2"] + t2).reshape(1, d)

    npad = max(LANE, ((num_classes + LANE - 1) // LANE) * LANE)
    wout = jnp.zeros((d, npad), jnp.float32).at[:, :num_classes].set(p["out_w"])
    bout = jnp.zeros((1, npad), jnp.float32).at[0, :num_classes].set(p["out_b"])

    enc = dict(wqkv=wqkv, bqkv=bqkv, wo=wo, bo=bo,
               w1=p["ffn_w1"], b1=p["ffn_b1"].reshape(1, dff),
               w2=w2, b2=b2, wout=wout, bout=bout)

    proj = dict(
        w1=jnp.stack([p["pi_w1"], p["pt_w1"]]),
        b1=jnp.stack([p["pi_b1"], p["pt_b1"]])[:, None, :],
        w2=jnp.stack([p["pi_w2"], p["pt_w2"]]),
        b2=jnp.stack([p["pi_b2"], p["pt_b2"]])[:, None, :],
        g=jnp.stack([p["pi_ln_g"], p["pt_ln_g"]])[:, None, :],
        beta=jnp.stack([p["pi_ln_b"], p["pt_ln_b"]])[:, None, :],
        tok=jnp.stack([p["img_token"][0, 0], p["text_token"][0, 0]])[:, None, :],
    )
    return dict(proj=proj, enc=enc, cls_token=p["cls_token"])


# ---------------------------------- model forward ----------------------------------

def forward(folded, X_img, X_text, pm_img, t_img, pm_text, t_text,
            *, n_heads, d_model, num_layers, num_classes):
    del t_img, t_text  # use_time=False -> learnable pos-enc is identity without time
    B, S_img, F = X_img.shape
    S_text = X_text.shape[1]
    sqrt_d = math.sqrt(d_model)
    pr = folded["proj"]

    if S_img == S_text:
        # one fused kernel, grid over the 2 modalities (stacked weights)
        x_stack = jnp.stack([X_img.reshape(B * S_img, F),
                             X_text.reshape(B * S_text, F)])
        y = pallas_projection_heads(x_stack, pr["w1"], pr["b1"], pr["w2"], pr["b2"],
                                    pr["g"], pr["beta"], pr["tok"], sqrt_d)
        inp_img = y[0].reshape(B, S_img, d_model)
        inp_text = y[1].reshape(B, S_text, d_model)
    else:
        outs = []
        for m, (Xm, Sm) in enumerate(((X_img, S_img), (X_text, S_text))):
            ym = pallas_projection_heads(
                Xm.reshape(1, B * Sm, F),
                pr["w1"][m:m + 1], pr["b1"][m:m + 1], pr["w2"][m:m + 1],
                pr["b2"][m:m + 1], pr["g"][m:m + 1], pr["beta"][m:m + 1],
                pr["tok"][m:m + 1], sqrt_d)
            outs.append(ym[0].reshape(B, Sm, d_model))
        inp_img, inp_text = outs

    cls = jnp.broadcast_to(folded["cls_token"].reshape(1, 1, d_model), (B, 1, d_model))
    inp = jnp.concatenate([cls, inp_img, inp_text], axis=1)              # (B, L, d)
    L = 1 + S_img + S_text

    # TODO(synk): generate_attention_mask is not provided in the reference; assume a
    # key-padding additive mask (0 keep / -1e9 pad) with a keep-slot prepended for CLS.
    pm = jnp.concatenate([jnp.ones((B, 1), dtype=bool),
                          pm_img.astype(bool), pm_text.astype(bool)], axis=1)
    add_mask = jnp.where(pm, 0.0, -1e9).astype(jnp.float32).reshape(B, 1, L)

    # Reference loop feeds `inp` to the SAME layer object every iteration and keeps
    # only the last result -> equivalent to one application in eval mode.
    del num_layers
    logits_pad, cls_weight_scores = pallas_encoder_and_head(
        inp, add_mask, folded["enc"], n_heads)
    logits = logits_pad[:, :num_classes]
    return logits, None, cls_weight_scores


# ------------------------------ pure-JAX reference ---------------------------------

def _ref_forward(p, X_img, X_text, pm_img, pm_text, *, n_heads, d_model, num_classes):
    def gelu(x):
        return 0.5 * x * (1.0 + jax.scipy.special.erf(x * SQRT1_2))

    def proj(x, w1, b1, w2, b2, g, bt):
        pj = x @ w1 + b1
        y = gelu(pj) @ w2 + b2 + pj
        mu = y.mean(-1, keepdims=True)
        var = ((y - mu) ** 2).mean(-1, keepdims=True)
        return (y - mu) / jnp.sqrt(var + 1e-5) * g + bt

    B, S_img, F = X_img.shape
    S_text = X_text.shape[1]
    sq = math.sqrt(d_model)
    xi = proj(X_img.reshape(B * S_img, F), p["pi_w1"], p["pi_b1"], p["pi_w2"],
              p["pi_b2"], p["pi_ln_g"], p["pi_ln_b"]).reshape(B, S_img, d_model)
    xi = xi * sq + p["img_token"][0, 0]
    xt = proj(X_text.reshape(B * S_text, F), p["pt_w1"], p["pt_b1"], p["pt_w2"],
              p["pt_b2"], p["pt_ln_g"], p["pt_ln_b"]).reshape(B, S_text, d_model)
    xt = xt * sq + p["text_token"][0, 0]
    cls = jnp.broadcast_to(p["cls_token"], (B, 1, d_model))
    x = jnp.concatenate([cls, xi, xt], axis=1)
    L = x.shape[1]
    Dh = d_model // n_heads
    pm = jnp.concatenate([jnp.ones((B, 1), bool), pm_img, pm_text], axis=1)
    amask = jnp.where(pm, 0.0, -1e9)[:, None, None, :]

    def lin(a, w, b):
        return a @ w + b

    q = lin(x, p["wq"], p["bq"]).reshape(B, L, n_heads, Dh).transpose(0, 2, 1, 3)
    k = lin(x, p["wk"], p["bk"]).reshape(B, L, n_heads, Dh).transpose(0, 2, 1, 3)
    v = lin(x, p["wv"], p["bv"]).reshape(B, L, n_heads, Dh).transpose(0, 2, 1, 3)
    s = jnp.einsum("bhqd,bhkd->bhqk", q, k) / math.sqrt(Dh) + amask
    prob = jax.nn.softmax(s, axis=-1)
    ctx = jnp.einsum("bhqk,bhkd->bhqd", prob, v).transpose(0, 2, 1, 3).reshape(B, L, d_model)
    s1 = p["bn1_g"] / jnp.sqrt(p["bn1_rv"] + 1e-5)
    src = (2.0 * lin(ctx, p["wo"], p["bo"]) - p["bn1_rm"]) * s1 + p["bn1_b"]
    f = lin(gelu(lin(src, p["ffn_w1"], p["ffn_b1"])), p["ffn_w2"], p["ffn_b2"])
    s2 = p["bn2_g"] / jnp.sqrt(p["bn2_rv"] + 1e-5)
    out = (2.0 * f - p["bn2_rm"]) * s2 + p["bn2_b"]
    logits = lin(gelu(out)[:, 0, :], p["out_w"], p["out_b"])
    return logits, prob.mean(axis=1)


# --------------------------------------- main ---------------------------------------

if __name__ == "__main__":
    B, S_img, S_text, feat_dim = 2, 8, 8, 16
    d_model, n_heads, num_layers = 32, 4, 2
    dim_feedforward, num_classes = 64, 3

    root = jax.random.PRNGKey(0)
    kp, kx1, kx2, kt1, kt2 = jax.random.split(root, 5)
    params = init_params(kp, feat_dim, d_model, dim_feedforward, num_classes)
    folded = fold_params(params)

    X_img = jax.random.normal(kx1, (B, S_img, feat_dim), jnp.float32)
    X_text = jax.random.normal(kx2, (B, S_text, feat_dim), jnp.float32)
    padding_masks_img = jnp.ones((B, S_img), dtype=bool)
    padding_masks_text = jnp.ones((B, S_text), dtype=bool)
    time_padded_img = jax.random.uniform(kt1, (B, S_img), jnp.float32)
    time_padded_text = jax.random.uniform(kt2, (B, S_text), jnp.float32)

    fwd = jax.jit(functools.partial(
        forward, n_heads=n_heads, d_model=d_model,
        num_layers=num_layers, num_classes=num_classes))
    logits, feat, cls_weight_scores = fwd(
        folded, X_img, X_text,
        padding_masks_img, time_padded_img,
        padding_masks_text, time_padded_text)
    jax.block_until_ready((logits, cls_weight_scores))

    L = 1 + S_img + S_text
    assert logits.shape == (B, num_classes), logits.shape
    assert feat is None
    assert cls_weight_scores.shape == (B, L, L), cls_weight_scores.shape
    assert bool(jnp.all(jnp.isfinite(logits)))
    assert bool(jnp.all(jnp.isfinite(cls_weight_scores)))

    # correctness vs a pure-JAX reference of the same forward (unfolded params)
    ref_logits, ref_scores = _ref_forward(
        params, X_img, X_text, padding_masks_img, padding_masks_text,
        n_heads=n_heads, d_model=d_model, num_classes=num_classes)
    assert jnp.allclose(logits, ref_logits, atol=1e-3, rtol=1e-3)
    assert jnp.allclose(cls_weight_scores, ref_scores, atol=1e-3, rtol=1e-3)

    print("KERNEL_OK")
</pallas_src>

<mosaic_0001>
module attributes {stable_mosaic.version = 11 : i64} {
  func.func @_encoder_cls_kernel(%arg0: i32, %arg1: memref<1x17x32xf32, #tpu.memory_space<vmem>>, %arg2: memref<1x1x17xf32, #tpu.memory_space<vmem>>, %arg3: memref<32x96xf32, #tpu.memory_space<vmem>>, %arg4: memref<1x96xf32, #tpu.memory_space<vmem>>, %arg5: memref<32x32xf32, #tpu.memory_space<vmem>>, %arg6: memref<1x32xf32, #tpu.memory_space<vmem>>, %arg7: memref<32x64xf32, #tpu.memory_space<vmem>>, %arg8: memref<1x64xf32, #tpu.memory_space<vmem>>, %arg9: memref<64x32xf32, #tpu.memory_space<vmem>>, %arg10: memref<1x32xf32, #tpu.memory_space<vmem>>, %arg11: memref<32x128xf32, #tpu.memory_space<vmem>>, %arg12: memref<1x128xf32, #tpu.memory_space<vmem>>, %arg13: memref<1x1x128xf32, #tpu.memory_space<vmem>>, %arg14: memref<1x17x17xf32, #tpu.memory_space<vmem>>) attributes {dimension_semantics = [#tpu.dimension_semantics<arbitrary>], iteration_bounds = array<i64: 2>, scalar_prefetch = 0 : i64, scratch_operands = 0 : i64, tpu.core_type = #tpu.core_type<tc>, window_params = [{transform_indices = @transform_0, window_bounds = array<i64: 1, 17, 32>}, {transform_indices = @transform_1, window_bounds = array<i64: 1, 1, 17>}, {pipeline_mode = #tpu.pipeline_mode<synchronous>, transform_indices = @transform_2, window_bounds = array<i64: 32, 96>}, {pipeline_mode = #tpu.pipeline_mode<synchronous>, transform_indices = @transform_3, window_bounds = array<i64: 1, 96>}, {pipeline_mode = #tpu.pipeline_mode<synchronous>, transform_indices = @transform_4, window_bounds = array<i64: 32, 32>}, {pipeline_mode = #tpu.pipeline_mode<synchronous>, transform_indices = @transform_5, window_bounds = array<i64: 1, 32>}, {pipeline_mode = #tpu.pipeline_mode<synchronous>, transform_indices = @transform_6, window_bounds = array<i64: 32, 64>}, {pipeline_mode = #tpu.pipeline_mode<synchronous>, transform_indices = @transform_7, window_bounds = array<i64: 1, 64>}, {pipeline_mode = #tpu.pipeline_mode<synchronous>, transform_indices = @transform_8, window_bounds = array<i64: 64, 32>}, {pipeline_mode = #tpu.pipeline_mode<synchronous>, transform_indices = @transform_9, window_bounds = array<i64: 1, 32>}, {pipeline_mode = #tpu.pipeline_mode<synchronous>, transform_indices = @transform_10, window_bounds = array<i64: 32, 128>}, {pipeline_mode = #tpu.pipeline_mode<synchronous>, transform_indices = @transform_11, window_bounds = array<i64: 1, 128>}, {transform_indices = @transform_12, window_bounds = array<i64: 1, 1, 128>}, {transform_indices = @transform_13, window_bounds = array<i64: 1, 17, 17>}]} {
    %c0 = arith.constant 0 : index
    %c0_0 = arith.constant 0 : index
    %c0_1 = arith.constant 0 : index
    %0 = vector.load %arg1[%c0, %c0_0, %c0_1] : memref<1x17x32xf32, #tpu.memory_space<vmem>>, vector<1x17x32xf32>
    %1 = vector.shape_cast %0 : vector<1x17x32xf32> to vector<17x32xf32>
    %c0_2 = arith.constant 0 : index
    %c0_3 = arith.constant 0 : index
    %c0_4 = arith.constant 0 : index
    %2 = vector.load %arg2[%c0_2, %c0_3, %c0_4] : memref<1x1x17xf32, #tpu.memory_space<vmem>>, vector<1x1x17xf32>
    %3 = vector.shape_cast %2 : vector<1x1x17xf32> to vector<1x17xf32>
    %c0_5 = arith.constant 0 : index
    %c0_6 = arith.constant 0 : index
    %4 = vector.load %arg3[%c0_5, %c0_6] : memref<32x96xf32, #tpu.memory_space<vmem>>, vector<32x96xf32>
    %cst = arith.constant dense<0.000000e+00> : vector<17x96xf32>
    %5 = tpu.matmul %1, %4, %cst {dimension_numbers = #tpu.dot_dimension_numbers<[1], [0], [0], [1], [0, 0, 1, 1], [], []>} : vector<17x32xf32>, vector<32x96xf32>, vector<17x96xf32> -> vector<17x96xf32>
    %c0_7 = arith.constant 0 : index
    %c0_8 = arith.constant 0 : index
    %6 = vector.load %arg4[%c0_7, %c0_8] : memref<1x96xf32, #tpu.memory_space<vmem>>, vector<1x96xf32>
    %7 = vector.broadcast %6 : vector<1x96xf32> to vector<17x96xf32>
    %8 = arith.addf %5, %7 : vector<17x96xf32>
    %9 = vector.extract_strided_slice %8 {offsets = [0, 0], sizes = [17, 32], strides = [1, 1]} : vector<17x96xf32> to vector<17x32xf32>
    %10 = vector.extract_strided_slice %8 {offsets = [0, 32], sizes = [17, 32], strides = [1, 1]} : vector<17x96xf32> to vector<17x32xf32>
    %11 = vector.extract_strided_slice %8 {offsets = [0, 64], sizes = [17, 32], strides = [1, 1]} : vector<17x96xf32> to vector<17x32xf32>
    %cst_9 = arith.constant 0.000000e+00 : f32
    %12 = vector.broadcast %cst_9 : f32 to vector<17x17xf32>
    %13 = vector.extract_strided_slice %9 {offsets = [0, 0], sizes = [17, 8], strides = [1, 1]} : vector<17x32xf32> to vector<17x8xf32>
    %14 = vector.extract_strided_slice %10 {offsets = [0, 0], sizes = [17, 8], strides = [1, 1]} : vector<17x32xf32> to vector<17x8xf32>
    %15 = vector.extract_strided_slice %11 {offsets = [0, 0], sizes = [17, 8], strides = [1, 1]} : vector<17x32xf32> to vector<17x8xf32>
    %cst_10 = arith.constant dense<0.000000e+00> : vector<17x17xf32>
    %16 = tpu.matmul %13, %14, %cst_10 {dimension_numbers = #tpu.dot_dimension_numbers<[1], [1], [0], [0], [0, 0, 1, 0], [], []>} : vector<17x8xf32>, vector<17x8xf32>, vector<17x17xf32> -> vector<17x17xf32>
    %cst_11 = arith.constant 0.353553385 : f32
    %17 = vector.broadcast %cst_11 : f32 to vector<17x17xf32>
    %18 = arith.mulf %16, %17 : vector<17x17xf32>
    %19 = vector.broadcast %3 : vector<1x17xf32> to vector<17x17xf32>
    %20 = arith.addf %18, %19 : vector<17x17xf32>
    %cst_12 = arith.constant dense<0xFF800000> : vector<17xf32>
    %21 = vector.multi_reduction <maximumf>, %20, %cst_12 [1] : vector<17x17xf32> to vector<17xf32>
    %22 = vector.shape_cast %21 : vector<17xf32> to vector<17x1xf32>
    %23 = vector.broadcast %22 : vector<17x1xf32> to vector<17x17xf32>
    %24 = arith.subf %20, %23 : vector<17x17xf32>
    %25 = math.exp %24 : vector<17x17xf32>
    %cst_13 = arith.constant dense<0.000000e+00> : vector<17xf32>
    %26 = vector.multi_reduction <add>, %25, %cst_13 [1] : vector<17x17xf32> to vector<17xf32>
    %27 = vector.shape_cast %26 : vector<17xf32> to vector<17x1xf32>
    %28 = vector.broadcast %27 : vector<17x1xf32> to vector<17x17xf32>
    %29 = arith.divf %25, %28 : vector<17x17xf32>
    %30 = arith.addf %12, %29 : vector<17x17xf32>
    %cst_14 = arith.constant dense<0.000000e+00> : vector<17x8xf32>
    %31 = tpu.matmul %29, %15, %cst_14 {dimension_numbers = #tpu.dot_dimension_numbers<[1], [0], [0], [1], [0, 0, 1, 1], [], []>} : vector<17x17xf32>, vector<17x8xf32>, vector<17x8xf32> -> vector<17x8xf32>
    %32 = vector.extract_strided_slice %9 {offsets = [0, 8], sizes = [17, 8], strides = [1, 1]} : vector<17x32xf32> to vector<17x8xf32>
    %33 = vector.extract_strided_slice %10 {offsets = [0, 8], sizes = [17, 8], strides = [1, 1]} : vector<17x32xf32> to vector<17x8xf32>
    %34 = vector.extract_strided_slice %11 {offsets = [0, 8], sizes = [17, 8], strides = [1, 1]} : vector<17x32xf32> to vector<17x8xf32>
    %cst_15 = arith.constant dense<0.000000e+00> : vector<17x17xf32>
    %35 = tpu.matmul %32, %33, %cst_15 {dimension_numbers = #tpu.dot_dimension_numbers<[1], [1], [0], [0], [0, 0, 1, 0], [], []>} : vector<17x8xf32>, vector<17x8xf32>, vector<17x17xf32> -> vector<17x17xf32>
    %cst_16 = arith.constant 0.353553385 : f32
    %36 = vector.broadcast %cst_16 : f32 to vector<17x17xf32>
    %37 = arith.mulf %35, %36 : vector<17x17xf32>
    %38 = vector.broadcast %3 : vector<1x17xf32> to vector<17x17xf32>
    %39 = arith.addf %37, %38 : vector<17x17xf32>
    %cst_17 = arith.constant dense<0xFF800000> : vector<17xf32>
    %40 = vector.multi_reduction <maximumf>, %39, %cst_17 [1] : vector<17x17xf32> to vector<17xf32>
    %41 = vector.shape_cast %40 : vector<17xf32> to vector<17x1xf32>
    %42 = vector.broadcast %41 : vector<17x1xf32> to vector<17x17xf32>
    %43 = arith.subf %39, %42 : vector<17x17xf32>
    %44 = math.exp %43 : vector<17x17xf32>
    %cst_18 = arith.constant dense<0.000000e+00> : vector<17xf32>
    %45 = vector.multi_reduction <add>, %44, %cst_18 [1] : vector<17x17xf32> to vector<17xf32>
    %46 = vector.shape_cast %45 : vector<17xf32> to vector<17x1xf32>
    %47 = vector.broadcast %46 : vector<17x1xf32> to vector<17x17xf32>
    %48 = arith.divf %44, %47 : vector<17x17xf32>
    %49 = arith.addf %30, %48 : vector<17x17xf32>
    %cst_19 = arith.constant dense<0.000000e+00> : vector<17x8xf32>
    %50 = tpu.matmul %48, %34, %cst_19 {dimension_numbers = #tpu.dot_dimension_numbers<[1], [0], [0], [1], [0, 0, 1, 1], [], []>} : vector<17x17xf32>, vector<17x8xf32>, vector<17x8xf32> -> vector<17x8xf32>
    %51 = vector.extract_strided_slice %9 {offsets = [0, 16], sizes = [17, 8], strides = [1, 1]} : vector<17x32xf32> to vector<17x8xf32>
    %52 = vector.extract_strided_slice %10 {offsets = [0, 16], sizes = [17, 8], strides = [1, 1]} : vector<17x32xf32> to vector<17x8xf32>
    %53 = vector.extract_strided_slice %11 {offsets = [0, 16], sizes = [17, 8], strides = [1, 1]} : vector<17x32xf32> to vector<17x8xf32>
    %cst_20 = arith.constant dense<0.000000e+00> : vector<17x17xf32>
    %54 = tpu.matmul %51, %52, %cst_20 {dimension_numbers = #tpu.dot_dimension_numbers<[1], [1], [0], [0], [0, 0, 1, 0], [], []>} : vector<17x8xf32>, vector<17x8xf32>, vector<17x17xf32> -> vector<17x17xf32>
    %cst_21 = arith.constant 0.353553385 : f32
    %55 = vector.broadcast %cst_21 : f32 to vector<17x17xf32>
    %56 = arith.mulf %54, %55 : vector<17x17xf32>
    %57 = vector.broadcast %3 : vector<1x17xf32> to vector<17x17xf32>
    %58 = arith.addf %56, %57 : vector<17x17xf32>
    %cst_22 = arith.constant dense<0xFF800000> : vector<17xf32>
    %59 = vector.multi_reduction <maximumf>, %58, %cst_22 [1] : vector<17x17xf32> to vector<17xf32>
    %60 = vector.shape_cast %59 : vector<17xf32> to vector<17x1xf32>
    %61 = vector.broadcast %60 : vector<17x1xf32> to vector<17x17xf32>
    %62 = arith.subf %58, %61 : vector<17x17xf32>
    %63 = math.exp %62 : vector<17x17xf32>
    %cst_23 = arith.constant dense<0.000000e+00> : vector<17xf32>
    %64 = vector.multi_reduction <add>, %63, %cst_23 [1] : vector<17x17xf32> to vector<17xf32>
    %65 = vector.shape_cast %64 : vector<17xf32> to vector<17x1xf32>
    %66 = vector.broadcast %65 : vector<17x1xf32> to vector<17x17xf32>
    %67 = arith.divf %63, %66 : vector<17x17xf32>
    %68 = arith.addf %49, %67 : vector<17x17xf32>
    %cst_24 = arith.constant dense<0.000000e+00> : vector<17x8xf32>
    %69 = tpu.matmul %67, %53, %cst_24 {dimension_numbers = #tpu.dot_dimension_numbers<[1], [0], [0], [1], [0, 0, 1, 1], [], []>} : vector<17x17xf32>, vector<17x8xf32>, vector<17x8xf32> -> vector<17x8xf32>
    %70 = vector.extract_strided_slice %9 {offsets = [0, 24], sizes = [17, 8], strides = [1, 1]} : vector<17x32xf32> to vector<17x8xf32>
    %71 = vector.extract_strided_slice %10 {offsets = [0, 24], sizes = [17, 8], strides = [1, 1]} : vector<17x32xf32> to vector<17x8xf32>
    %72 = vector.extract_strided_slice %11 {offsets = [0, 24], sizes = [17, 8], strides = [1, 1]} : vector<17x32xf32> to vector<17x8xf32>
    %cst_25 = arith.constant dense<0.000000e+00> : vector<17x17xf32>
    %73 = tpu.matmul %70, %71, %cst_25 {dimension_numbers = #tpu.dot_dimension_numbers<[1], [1], [0], [0], [0, 0, 1, 0], [], []>} : vector<17x8xf32>, vector<17x8xf32>, vector<17x17xf32> -> vector<17x17xf32>
    %cst_26 = arith.constant 0.353553385 : f32
    %74 = vector.broadcast %cst_26 : f32 to vector<17x17xf32>
    %75 = arith.mulf %73, %74 : vector<17x17xf32>
    %76 = vector.broadcast %3 : vector<1x17xf32> to vector<17x17xf32>
    %77 = arith.addf %75, %76 : vector<17x17xf32>
    %cst_27 = arith.constant dense<0xFF800000> : vector<17xf32>
    %78 = vector.multi_reduction <maximumf>, %77, %cst_27 [1] : vector<17x17xf32> to vector<17xf32>
    %79 = vector.shape_cast %78 : vector<17xf32> to vector<17x1xf32>
    %80 = vector.broadcast %79 : vector<17x1xf32> to vector<17x17xf32>
    %81 = arith.subf %77, %80 : vector<17x17xf32>
    %82 = math.exp %81 : vector<17x17xf32>
    %cst_28 = arith.constant dense<0.000000e+00> : vector<17xf32>
    %83 = vector.multi_reduction <add>, %82, %cst_28 [1] : vector<17x17xf32> to vector<17xf32>
    %84 = vector.shape_cast %83 : vector<17xf32> to vector<17x1xf32>
    %85 = vector.broadcast %84 : vector<17x1xf32> to vector<17x17xf32>
    %86 = arith.divf %82, %85 : vector<17x17xf32>
    %87 = arith.addf %68, %86 : vector<17x17xf32>
    %cst_29 = arith.constant dense<0.000000e+00> : vector<17x8xf32>
    %88 = tpu.matmul %86, %72, %cst_29 {dimension_numbers = #tpu.dot_dimension_numbers<[1], [0], [0], [1], [0, 0, 1, 1], [], []>} : vector<17x17xf32>, vector<17x8xf32>, vector<17x8xf32> -> vector<17x8xf32>
    %cst_30 = arith.constant 2.500000e-01 : f32
    %89 = vector.broadcast %cst_30 : f32 to vector<17x17xf32>
    %90 = arith.mulf %87, %89 : vector<17x17xf32>
    %c0_31 = arith.constant 0 : index
    %c0_32 = arith.constant 0 : index
    %c0_33 = arith.constant 0 : index
    %91 = vector.load %arg14[%c0_31, %c0_32, %c0_33] : memref<1x17x17xf32, #tpu.memory_space<vmem>>, vector<1x17x17xf32>
    %92 = vector.shape_cast %91 : vector<1x17x17xf32> to vector<17x17xf32>
    %93 = vector.shape_cast %90 : vector<17x17xf32> to vector<1x17x17xf32>
    tpu.vector_store %arg14[%c0_31, %c0_32, %c0_33], %93 {strides = array<i32>} : memref<1x17x17xf32, #tpu.memory_space<vmem>>, vector<1x17x17xf32>,
    %94 = tpu.concatenate %31, %50, %69, %88 in 1 : vector<17x8xf32>, vector<17x8xf32>, vector<17x8xf32>, vector<17x8xf32> -> vector<17x32xf32>
    %c0_34 = arith.constant 0 : index
    %c0_35 = arith.constant 0 : index
    %95 = vector.load %arg5[%c0_34, %c0_35] : memref<32x32xf32, #tpu.memory_space<vmem>>, vector<32x32xf32>
    %cst_36 = arith.constant dense<0.000000e+00> : vector<17x32xf32>
    %96 = tpu.matmul %94, %95, %cst_36 {dimension_numbers = #tpu.dot_dimension_numbers<[1], [0], [0], [1], [0, 0, 1, 1], [], []>} : vector<17x32xf32>, vector<32x32xf32>, vector<17x32xf32> -> vector<17x32xf32>
    %c0_37 = arith.constant 0 : index
    %c0_38 = arith.constant 0 : index
    %97 = vector.load %arg6[%c0_37, %c0_38] : memref<1x32xf32, #tpu.memory_space<vmem>>, vector<1x32xf32>
    %98 = vector.broadcast %97 : vector<1x32xf32> to vector<17x32xf32>
    %99 = arith.addf %96, %98 : vector<17x32xf32>
    %c0_39 = arith.constant 0 : index
    %c0_40 = arith.constant 0 : index
    %100 = vector.load %arg7[%c0_39, %c0_40] : memref<32x64xf32, #tpu.memory_space<vmem>>, vector<32x64xf32>
    %cst_41 = arith.constant dense<0.000000e+00> : vector<17x64xf32>
    %101 = tpu.matmul %99, %100, %cst_41 {dimension_numbers = #tpu.dot_dimension_numbers<[1], [0], [0], [1], [0, 0, 1, 1], [], []>} : vector<17x32xf32>, vector<32x64xf32>, vector<17x64xf32> -> vector<17x64xf32>
    %c0_42 = arith.constant 0 : index
    %c0_43 = arith.constant 0 : index
    %102 = vector.load %arg8[%c0_42, %c0_43] : memref<1x64xf32, #tpu.memory_space<vmem>>, vector<1x64xf32>
    %103 = vector.broadcast %102 : vector<1x64xf32> to vector<17x64xf32>
    %104 = arith.addf %101, %103 : vector<17x64xf32>
    %cst_44 = arith.constant 5.000000e-01 : f32
    %105 = vector.broadcast %cst_44 : f32 to vector<17x64xf32>
    %106 = arith.mulf %105, %104 : vector<17x64xf32>
    %cst_45 = arith.constant 0.707106769 : f32
    %107 = vector.broadcast %cst_45 : f32 to vector<17x64xf32>
    %108 = arith.mulf %104, %107 : vector<17x64xf32>
    %109 = math.erf %108 : vector<17x64xf32>
    %cst_46 = arith.constant 1.000000e+00 : f32
    %110 = vector.broadcast %cst_46 : f32 to vector<17x64xf32>
    %111 = arith.addf %110, %109 : vector<17x64xf32>
    %112 = arith.mulf %106, %111 : vector<17x64xf32>
    %c0_47 = arith.constant 0 : index
    %c0_48 = arith.constant 0 : index
    %113 = vector.load %arg9[%c0_47, %c0_48] : memref<64x32xf32, #tpu.memory_space<vmem>>, vector<64x32xf32>
    %cst_49 = arith.constant dense<0.000000e+00> : vector<17x32xf32>
    %114 = tpu.matmul %112, %113, %cst_49 {dimension_numbers = #tpu.dot_dimension_numbers<[1], [0], [0], [1], [0, 0, 1, 1], [], []>} : vector<17x64xf32>, vector<64x32xf32>, vector<17x32xf32> -> vector<17x32xf32>
    %c0_50 = arith.constant 0 : index
    %c0_51 = arith.constant 0 : index
    %115 = vector.load %arg10[%c0_50, %c0_51] : memref<1x32xf32, #tpu.memory_space<vmem>>, vector<1x32xf32>
    %116 = vector.broadcast %115 : vector<1x32xf32> to vector<17x32xf32>
    %117 = arith.addf %114, %116 : vector<17x32xf32>
    %118 = vector.extract_strided_slice %117 {offsets = [0, 0], sizes = [1, 32], strides = [1, 1]} : vector<17x32xf32> to vector<1x32xf32>
    %cst_52 = arith.constant 5.000000e-01 : f32
    %119 = vector.broadcast %cst_52 : f32 to vector<1x32xf32>
    %120 = arith.mulf %119, %118 : vector<1x32xf32>
    %cst_53 = arith.constant 0.707106769 : f32
    %121 = vector.broadcast %cst_53 : f32 to vector<1x32xf32>
    %122 = arith.mulf %118, %121 : vector<1x32xf32>
    %123 = math.erf %122 : vector<1x32xf32>
    %cst_54 = arith.constant 1.000000e+00 : f32
    %124 = vector.broadcast %cst_54 : f32 to vector<1x32xf32>
    %125 = arith.addf %124, %123 : vector<1x32xf32>
    %126 = arith.mulf %120, %125 : vector<1x32xf32>
    %c0_55 = arith.constant 0 : index
    %c0_56 = arith.constant 0 : index
    %127 = vector.load %arg11[%c0_55, %c0_56] : memref<32x128xf32, #tpu.memory_space<vmem>>, vector<32x128xf32>
    %cst_57 = arith.constant dense<0.000000e+00> : vector<1x128xf32>
    %128 = tpu.matmul %126, %127, %cst_57 {dimension_numbers = #tpu.dot_dimension_numbers<[1], [0], [0], [1], [0, 0, 1, 1], [], []>} : vector<1x32xf32>, vector<32x128xf32>, vector<1x128xf32> -> vector<1x128xf32>
    %c0_58 = arith.constant 0 : index
    %c0_59 = arith.constant 0 : index
    %129 = vector.load %arg12[%c0_58, %c0_59] : memref<1x128xf32, #tpu.memory_space<vmem>>, vector<1x128xf32>
    %130 = arith.addf %128, %129 : vector<1x128xf32>
    %c0_60 = arith.constant 0 : index
    %c0_61 = arith.constant 0 : index
    %c0_62 = arith.constant 0 : index
    %131 = vector.load %arg13[%c0_60, %c0_61, %c0_62] : memref<1x1x128xf32, #tpu.memory_space<vmem>>, vector<1x1x128xf32>
    %132 = vector.shape_cast %131 : vector<1x1x128xf32> to vector<1x128xf32>
    %133 = vector.shape_cast %130 : vector<1x128xf32> to vector<1x1x128xf32>
    tpu.vector_store %arg13[%c0_60, %c0_61, %c0_62], %133 {strides = array<i32>} : memref<1x1x128xf32, #tpu.memory_space<vmem>>, vector<1x1x128xf32>,
    return
  }
  func.func @transform_0(%arg0: i32) -> (i32, i32, i32) {
    %c0_i32 = arith.constant 0 : i32
    %c0_i32_0 = arith.constant 0 : i32
    %c0_i32_1 = arith.constant 0 : i32
    return %arg0, %c0_i32, %c0_i32_0 : i32, i32, i32
  }
  func.func @transform_1(%arg0: i32) -> (i32, i32, i32) {
    %c0_i32 = arith.constant 0 : i32
    %c0_i32_0 = arith.constant 0 : i32
    %c0_i32_1 = arith.constant 0 : i32
    return %arg0, %c0_i32, %c0_i32_0 : i32, i32, i32
  }
  func.func @transform_2(%arg0: i32) -> (i32, i32) {
    %c0_i32 = arith.constant 0 : i32
    %c0_i32_0 = arith.constant 0 : i32
    %c0_i32_1 = arith.constant 0 : i32
    return %c0_i32, %c0_i32_0 : i32, i32
  }
  func.func @transform_3(%arg0: i32) -> (i32, i32) {
    %c0_i32 = arith.constant 0 : i32
    %c0_i32_0 = arith.constant 0 : i32
    %c0_i32_1 = arith.constant 0 : i32
    return %c0_i32, %c0_i32_0 : i32, i32
  }
  func.func @transform_4(%arg0: i32) -> (i32, i32) {
    %c0_i32 = arith.constant 0 : i32
    %c0_i32_0 = arith.constant 0 : i32
    %c0_i32_1 = arith.constant 0 : i32
    return %c0_i32, %c0_i32_0 : i32, i32
  }
  func.func @transform_5(%arg0: i32) -> (i32, i32) {
    %c0_i32 = arith.constant 0 : i32
    %c0_i32_0 = arith.constant 0 : i32
    %c0_i32_1 = arith.constant 0 : i32
    return %c0_i32, %c0_i32_0 : i32, i32
  }
  func.func @transform_6(%arg0: i32) -> (i32, i32) {
    %c0_i32 = arith.constant 0 : i32
    %c0_i32_0 = arith.constant 0 : i32
    %c0_i32_1 = arith.constant 0 : i32
    return %c0_i32, %c0_i32_0 : i32, i32
  }
  func.func @transform_7(%arg0: i32) -> (i32, i32) {
    %c0_i32 = arith.constant 0 : i32
    %c0_i32_0 = arith.constant 0 : i32
    %c0_i32_1 = arith.constant 0 : i32
    return %c0_i32, %c0_i32_0 : i32, i32
  }
  func.func @transform_8(%arg0: i32) -> (i32, i32) {
    %c0_i32 = arith.constant 0 : i32
    %c0_i32_0 = arith.constant 0 : i32
    %c0_i32_1 = arith.constant 0 : i32
    return %c0_i32, %c0_i32_0 : i32, i32
  }
  func.func @transform_9(%arg0: i32) -> (i32, i32) {
    %c0_i32 = arith.constant 0 : i32
    %c0_i32_0 = arith.constant 0 : i32
    %c0_i32_1 = arith.constant 0 : i32
    return %c0_i32, %c0_i32_0 : i32, i32
  }
  func.func @transform_10(%arg0: i32) -> (i32, i32) {
    %c0_i32 = arith.constant 0 : i32
    %c0_i32_0 = arith.constant 0 : i32
    %c0_i32_1 = arith.constant 0 : i32
    return %c0_i32, %c0_i32_0 : i32, i32
  }
  func.func @transform_11(%arg0: i32) -> (i32, i32) {
    %c0_i32 = arith.constant 0 : i32
    %c0_i32_0 = arith.constant 0 : i32
    %c0_i32_1 = arith.constant 0 : i32
    return %c0_i32, %c0_i32_0 : i32, i32
  }
  func.func @transform_12(%arg0: i32) -> (i32, i32, i32) {
    %c0_i32 = arith.constant 0 : i32
    %c0_i32_0 = arith.constant 0 : i32
    %c0_i32_1 = arith.constant 0 : i32
    return %arg0, %c0_i32, %c0_i32_0 : i32, i32, i32
  }
  func.func @transform_13(%arg0: i32) -> (i32, i32, i32) {
    %c0_i32 = arith.constant 0 : i32
    %c0_i32_0 = arith.constant 0 : i32
    %c0_i32_1 = arith.constant 0 : i32
    return %arg0, %c0_i32, %c0_i32_0 : i32, i32, i32
  }
}

module attributes {stable_mosaic.version = 11 : i64} {
  func.func @_proj_head_kernel(%arg0: i32, %arg1: memref<1x16x16xf32, #tpu.memory_space<vmem>>, %arg2: memref<1x16x32xf32, #tpu.memory_space<vmem>>, %arg3: memref<1x1x32xf32, #tpu.memory_space<vmem>>, %arg4: memref<1x32x32xf32, #tpu.memory_space<vmem>>, %arg5: memref<1x1x32xf32, #tpu.memory_space<vmem>>, %arg6: memref<1x1x32xf32, #tpu.memory_space<vmem>>, %arg7: memref<1x1x32xf32, #tpu.memory_space<vmem>>, %arg8: memref<1x1x32xf32, #tpu.memory_space<vmem>>, %arg9: memref<1x16x32xf32, #tpu.memory_space<vmem>>) attributes {dimension_semantics = [#tpu.dimension_semantics<arbitrary>], iteration_bounds = array<i64: 2>, scalar_prefetch = 0 : i64, scratch_operands = 0 : i64, tpu.core_type = #tpu.core_type<tc>, window_params = [{transform_indices = @transform_0, window_bounds = array<i64: 1, 16, 16>}, {transform_indices = @transform_1, window_bounds = array<i64: 1, 16, 32>}, {transform_indices = @transform_2, window_bounds = array<i64: 1, 1, 32>}, {transform_indices = @transform_3, window_bounds = array<i64: 1, 32, 32>}, {transform_indices = @transform_4, window_bounds = array<i64: 1, 1, 32>}, {transform_indices = @transform_5, window_bounds = array<i64: 1, 1, 32>}, {transform_indices = @transform_6, window_bounds = array<i64: 1, 1, 32>}, {transform_indices = @transform_7, window_bounds = array<i64: 1, 1, 32>}, {transform_indices = @transform_8, window_bounds = array<i64: 1, 16, 32>}]} {
    %c0 = arith.constant 0 : index
    %c0_0 = arith.constant 0 : index
    %c0_1 = arith.constant 0 : index
    %0 = vector.load %arg1[%c0, %c0_0, %c0_1] : memref<1x16x16xf32, #tpu.memory_space<vmem>>, vector<1x16x16xf32>
    %1 = vector.shape_cast %0 : vector<1x16x16xf32> to vector<16x16xf32>
    %c0_2 = arith.constant 0 : index
    %c0_3 = arith.constant 0 : index
    %c0_4 = arith.constant 0 : index
    %2 = vector.load %arg2[%c0_2, %c0_3, %c0_4] : memref<1x16x32xf32, #tpu.memory_space<vmem>>, vector<1x16x32xf32>
    %3 = vector.shape_cast %2 : vector<1x16x32xf32> to vector<16x32xf32>
    %cst = arith.constant dense<0.000000e+00> : vector<16x32xf32>
    %4 = tpu.matmul %1, %3, %cst {dimension_numbers = #tpu.dot_dimension_numbers<[1], [0], [0], [1], [0, 0, 1, 1], [], []>} : vector<16x16xf32>, vector<16x32xf32>, vector<16x32xf32> -> vector<16x32xf32>
    %c0_5 = arith.constant 0 : index
    %c0_6 = arith.constant 0 : index
    %c0_7 = arith.constant 0 : index
    %5 = vector.load %arg3[%c0_5, %c0_6, %c0_7] : memref<1x1x32xf32, #tpu.memory_space<vmem>>, vector<1x1x32xf32>
    %6 = vector.shape_cast %5 : vector<1x1x32xf32> to vector<1x32xf32>
    %7 = vector.broadcast %6 : vector<1x32xf32> to vector<16x32xf32>
    %8 = arith.addf %4, %7 : vector<16x32xf32>
    %cst_8 = arith.constant 5.000000e-01 : f32
    %9 = vector.broadcast %cst_8 : f32 to vector<16x32xf32>
    %10 = arith.mulf %9, %8 : vector<16x32xf32>
    %cst_9 = arith.constant 0.707106769 : f32
    %11 = vector.broadcast %cst_9 : f32 to vector<16x32xf32>
    %12 = arith.mulf %8, %11 : vector<16x32xf32>
    %13 = math.erf %12 : vector<16x32xf32>
    %cst_10 = arith.constant 1.000000e+00 : f32
    %14 = vector.broadcast %cst_10 : f32 to vector<16x32xf32>
    %15 = arith.addf %14, %13 : vector<16x32xf32>
    %16 = arith.mulf %10, %15 : vector<16x32xf32>
    %c0_11 = arith.constant 0 : index
    %c0_12 = arith.constant 0 : index
    %c0_13 = arith.constant 0 : index
    %17 = vector.load %arg4[%c0_11, %c0_12, %c0_13] : memref<1x32x32xf32, #tpu.memory_space<vmem>>, vector<1x32x32xf32>
    %18 = vector.shape_cast %17 : vector<1x32x32xf32> to vector<32x32xf32>
    %cst_14 = arith.constant dense<0.000000e+00> : vector<16x32xf32>
    %19 = tpu.matmul %16, %18, %cst_14 {dimension_numbers = #tpu.dot_dimension_numbers<[1], [0], [0], [1], [0, 0, 1, 1], [], []>} : vector<16x32xf32>, vector<32x32xf32>, vector<16x32xf32> -> vector<16x32xf32>
    %c0_15 = arith.constant 0 : index
    %c0_16 = arith.constant 0 : index
    %c0_17 = arith.constant 0 : index
    %20 = vector.load %arg5[%c0_15, %c0_16, %c0_17] : memref<1x1x32xf32, #tpu.memory_space<vmem>>, vector<1x1x32xf32>
    %21 = vector.shape_cast %20 : vector<1x1x32xf32> to vector<1x32xf32>
    %22 = vector.broadcast %21 : vector<1x32xf32> to vector<16x32xf32>
    %23 = arith.addf %19, %22 : vector<16x32xf32>
    %24 = arith.addf %23, %8 : vector<16x32xf32>
    %cst_18 = arith.constant dense<0.000000e+00> : vector<16xf32>
    %25 = vector.multi_reduction <add>, %24, %cst_18 [1] : vector<16x32xf32> to vector<16xf32>
    %26 = vector.shape_cast %25 : vector<16xf32> to vector<16x1xf32>
    %cst_19 = arith.constant 3.200000e+01 : f32
    %27 = vector.broadcast %cst_19 : f32 to vector<16x1xf32>
    %28 = arith.divf %26, %27 : vector<16x1xf32>
    %29 = vector.broadcast %28 : vector<16x1xf32> to vector<16x32xf32>
    %30 = arith.subf %24, %29 : vector<16x32xf32>
    %31 = arith.mulf %30, %30 : vector<16x32xf32>
    %cst_20 = arith.constant dense<0.000000e+00> : vector<16xf32>
    %32 = vector.multi_reduction <add>, %31, %cst_20 [1] : vector<16x32xf32> to vector<16xf32>
    %33 = vector.shape_cast %32 : vector<16xf32> to vector<16x1xf32>
    %cst_21 = arith.constant 3.200000e+01 : f32
    %34 = vector.broadcast %cst_21 : f32 to vector<16x1xf32>
    %35 = arith.divf %33, %34 : vector<16x1xf32>
    %36 = vector.broadcast %28 : vector<16x1xf32> to vector<16x32xf32>
    %37 = arith.subf %24, %36 : vector<16x32xf32>
    %cst_22 = arith.constant 9.99999974E-6 : f32
    %38 = vector.broadcast %cst_22 : f32 to vector<16x1xf32>
    %39 = arith.addf %35, %38 : vector<16x1xf32>
    %40 = math.rsqrt %39 : vector<16x1xf32>
    %41 = vector.broadcast %40 : vector<16x1xf32> to vector<16x32xf32>
    %42 = arith.mulf %37, %41 : vector<16x32xf32>
    %c0_23 = arith.constant 0 : index
    %c0_24 = arith.constant 0 : index
    %c0_25 = arith.constant 0 : index
    %43 = vector.load %arg6[%c0_23, %c0_24, %c0_25] : memref<1x1x32xf32, #tpu.memory_space<vmem>>, vector<1x1x32xf32>
    %44 = vector.shape_cast %43 : vector<1x1x32xf32> to vector<1x32xf32>
    %45 = vector.broadcast %44 : vector<1x32xf32> to vector<16x32xf32>
    %46 = arith.mulf %42, %45 : vector<16x32xf32>
    %c0_26 = arith.constant 0 : index
    %c0_27 = arith.constant 0 : index
    %c0_28 = arith.constant 0 : index
    %47 = vector.load %arg7[%c0_26, %c0_27, %c0_28] : memref<1x1x32xf32, #tpu.memory_space<vmem>>, vector<1x1x32xf32>
    %48 = vector.shape_cast %47 : vector<1x1x32xf32> to vector<1x32xf32>
    %49 = vector.broadcast %48 : vector<1x32xf32> to vector<16x32xf32>
    %50 = arith.addf %46, %49 : vector<16x32xf32>
    %cst_29 = arith.constant 5.65685415 : f32
    %51 = vector.broadcast %cst_29 : f32 to vector<16x32xf32>
    %52 = arith.mulf %50, %51 : vector<16x32xf32>
    %c0_30 = arith.constant 0 : index
    %c0_31 = arith.constant 0 : index
    %c0_32 = arith.constant 0 : index
    %53 = vector.load %arg8[%c0_30, %c0_31, %c0_32] : memref<1x1x32xf32, #tpu.memory_space<vmem>>, vector<1x1x32xf32>
    %54 = vector.shape_cast %53 : vector<1x1x32xf32> to vector<1x32xf32>
    %55 = vector.broadcast %54 : vector<1x32xf32> to vector<16x32xf32>
    %56 = arith.addf %52, %55 : vector<16x32xf32>
    %c0_33 = arith.constant 0 : index
    %c0_34 = arith.constant 0 : index
    %c0_35 = arith.constant 0 : index
    %57 = vector.load %arg9[%c0_33, %c0_34, %c0_35] : memref<1x16x32xf32, #tpu.memory_space<vmem>>, vector<1x16x32xf32>
    %58 = vector.shape_cast %57 : vector<1x16x32xf32> to vector<16x32xf32>
    %59 = vector.shape_cast %56 : vector<16x32xf32> to vector<1x16x32xf32>
    tpu.vector_store %arg9[%c0_33, %c0_34, %c0_35], %59 {strides = array<i32>} : memref<1x16x32xf32, #tpu.memory_space<vmem>>, vector<1x16x32xf32>,
    return
  }
  func.func @transform_0(%arg0: i32) -> (i32, i32, i32) {
    %c0_i32 = arith.constant 0 : i32
    %c0_i32_0 = arith.constant 0 : i32
    %c0_i32_1 = arith.constant 0 : i32
    return %arg0, %c0_i32, %c0_i32_0 : i32, i32, i32
  }
  func.func @transform_1(%arg0: i32) -> (i32, i32, i32) {
    %c0_i32 = arith.constant 0 : i32
    %c0_i32_0 = arith.constant 0 : i32
    %c0_i32_1 = arith.constant 0 : i32
    return %arg0, %c0_i32, %c0_i32_0 : i32, i32, i32
  }
  func.func @transform_2(%arg0: i32) -> (i32, i32, i32) {
    %c0_i32 = arith.constant 0 : i32
    %c0_i32_0 = arith.constant 0 : i32
    %c0_i32_1 = arith.constant 0 : i32
    return %arg0, %c0_i32, %c0_i32_0 : i32, i32, i32
  }
  func.func @transform_3(%arg0: i32) -> (i32, i32, i32) {
    %c0_i32 = arith.constant 0 : i32
    %c0_i32_0 = arith.constant 0 : i32
    %c0_i32_1 = arith.constant 0 : i32
    return %arg0, %c0_i32, %c0_i32_0 : i32, i32, i32
  }
  func.func @transform_4(%arg0: i32) -> (i32, i32, i32) {
    %c0_i32 = arith.constant 0 : i32
    %c0_i32_0 = arith.constant 0 : i32
    %c0_i32_1 = arith.constant 0 : i32
    return %arg0, %c0_i32, %c0_i32_0 : i32, i32, i32
  }
  func.func @transform_5(%arg0: i32) -> (i32, i32, i32) {
    %c0_i32 = arith.constant 0 : i32
    %c0_i32_0 = arith.constant 0 : i32
    %c0_i32_1 = arith.constant 0 : i32
    return %arg0, %c0_i32, %c0_i32_0 : i32, i32, i32
  }
  func.func @transform_6(%arg0: i32) -> (i32, i32, i32) {
    %c0_i32 = arith.constant 0 : i32
    %c0_i32_0 = arith.constant 0 : i32
    %c0_i32_1 = arith.constant 0 : i32
    return %arg0, %c0_i32, %c0_i32_0 : i32, i32, i32
  }
  func.func @transform_7(%arg0: i32) -> (i32, i32, i32) {
    %c0_i32 = arith.constant 0 : i32
    %c0_i32_0 = arith.constant 0 : i32
    %c0_i32_1 = arith.constant 0 : i32
    return %arg0, %c0_i32, %c0_i32_0 : i32, i32, i32
  }
  func.func @transform_8(%arg0: i32) -> (i32, i32, i32) {
    %c0_i32 = arith.constant 0 : i32
    %c0_i32_0 = arith.constant 0 : i32
    %c0_i32_1 = arith.constant 0 : i32
    return %arg0, %c0_i32, %c0_i32_0 : i32, i32, i32
  }
}

</mosaic_0001>

<bundles_post_ra>
// kernel: forward.2
= control target key start
LH: loop header
LB: loop body
LE: loop exit
PB: predicated region body
PF: predicated region fallthrough
CT: control target
= control target key end

     0   :  { %s921_s27 = smov 0   ;;  %s981_s0 = inlined_call_operand.vmem [shape: f32[2,16,16], index: 0, kind: input, shape index: {}]   ;;  %s982_s1 = inlined_call_operand.vmem [shape: f32[2,16,32], index: 1, kind: input, shape index: {}]   ;;  %s983_s2 = inlined_call_operand.vmem [shape: f32[2,1,32], index: 2, kind: input, shape index: {}]   ;;  %s984_s3 = inlined_call_operand.vmem [shape: f32[2,32,32], index: 3, kind: input, shape index: {}]   ;;  %s985_s4 = inlined_call_operand.vmem [shape: f32[2,1,32], index: 4, kind: input, shape index: {}]   ;;  %s986_s5 = inlined_call_operand.vmem [shape: f32[2,1,32], index: 5, kind: input, shape index: {}]   ;;  %s987_s6 = inlined_call_operand.vmem [shape: f32[2,1,32], index: 6, kind: input, shape index: {}]   ;;  %s988_s7 = inlined_call_operand.vmem [shape: f32[2,1,32], index: 7, kind: input, shape index: {}]   ;;  %s989_s8 = inlined_call_operand.vmem [shape: f32[2,16,32], index: 8, kind: output, shape index: {}]  }
   0x1 LB: > { %s796_s28 = sadd.s32 4294967295, %s874_s27   ;;  %p800_p0 = scmp.ge.s32.totalorder %s874_s27, 1  ;;  %s874_s27 = sphi %s921_s27, %s18_s27  }
   0x2   : > { %p322_p1 = scmp.lt.s32.totalorder %s874_s27, 3 }
   0x4   : > { %p323_p2 = pnand %p800_p0, %p322_p1 }
   0x5   : > { %p381_p3 = scmp.lt.s32.totalorder (!%p323_p2), %s796_s28, 1 }
   0x6   : > { %326 = sbr.rel (%p323_p2) target bundleno = 753 (0x2f1), region = 52 }
   0xb   : > { %s991_s28 = smov (!%p381_p3, %s796_s28), 1  ;;  %vm427_vm0 = vcmask 130048   ;;  %vm530_vm1 = vcmask 261120  }
   0xc   : > { %s932_s29 = sshll.u32 %s991_s28, 4  ;;  %s822_s14 = sshll.u32 %s991_s28, 5 }
   0xd   : > { %s390_s10 = scalar_lea.vmem %s982_s1, %s932_s29  ;;  %s385_s13 = scalar_lea.vmem %s981_s0, %s932_s29 }
   0xe   : > { %v419_v0 = vld [vmem:[%s390_s10 + $0x8] sm:$0xff]  ;;  %v418_v1 = vld [vmem:[%s390_s10] sm:$0xff]  ;;  %s398_s17 = scalar_lea.vmem %s984_s3, %s822_s14  ;;  %s393_s20 = scalar_lea.vmem %s983_s2, %s991_s28 }
   0xf   : > { %834 = vmatprep.subr.mxu0 %v419_v0  ;;  %v416_v2 = vld [vmem:[%s385_s13] sm:$0xff]  ;;  %v417_v3 = vld [vmem:[%s385_s13 + $0x8] sm:$0xff]  ;;  %v522_v4 = vld [vmem:[%s398_s17 + $0x18] sm:$0xff]  ;;  %s401_s23 = scalar_lea.vmem %s985_s4, %s991_s28  ;;  %s404_s26 = scalar_lea.vmem %s986_s5, %s991_s28 }
  0x10   : > { %835 = vmatpush3.msra.mxu0 %v419_v0  ;;  %838 = vmatprep.mubr.msk.f32.mxu0 %vm427_vm0, %v416_v2  ;;  %v521_v5 = vld [vmem:[%s398_s17 + $0x10] sm:$0xff]  ;;  %v520_v6 = vld [vmem:[%s398_s17 + $0x8] sm:$0xff]  ;;  %v519_v7 = vld [vmem:[%s398_s17] sm:$0xff]  ;;  %s407_s10 = scalar_lea.vmem %s987_s6, %s991_s28  ;;  %s410_s13 = scalar_lea.vmem %s988_s7, %s991_s28 }
  0x11   : > { %836 = vmatprep.subr.mxu0 %v418_v1  ;;  %841 = vmatprep.subr.mxu1 %v522_v4  ;;  %v809_v8 = vld [vmem:[%s393_s20] ss:$0 sm:$0xff]  ;;  %s415_s16 = scalar_lea.vmem %s989_s8, %s932_s29 }
  0x12   : > { %837 = vmatpush3.msra.mxu0 %v418_v1  ;;  %842 = vmatpush3.msra.mxu1 %v522_v4  ;;  %v812_v24 = vld [vmem:[%s401_s23] ss:$0 sm:$0xff] }
  0x13   : > { %839 = vmatmul.mubr.msk.f32.vlgmr.msra.gmra.mxu0 %vm427_vm0, %v417_v3  ;;  %843 = vmatprep.subr.mxu1 %v521_v5  ;;  %v815_v49 = vld [vmem:[%s404_s26] ss:$0 sm:$0xff] }
  0x14   : > { %844 = vmatpush3.msra.mxu1 %v521_v5  ;;  %v816_v51 = vld [vmem:[%s407_s10] ss:$0 sm:$0xff] }
  0x15   : > { %845 = vmatprep.subr.mxu1 %v520_v6  ;;  %v817_v56 = vld [vmem:[%s410_s13] ss:$0 sm:$0xff] }
  0x16   : > { %846 = vmatpush3.msra.mxu1 %v520_v6 }
  0x17   : > { %847 = vmatprep.subr.mxu1 %v519_v7 }
  0x18   : > { %848 = vmatpush3.msra.mxu1 %v519_v7 }
  0xd3   : > { %v840_v9 = vpop.f32.mrf.mxu0 }
  0xd4   : > { %v506_v10 = vadd.f32 %v840_v9, %v809_v8 }
  0xd5   : > { %v500_v11 = vpop.f32.mrf.mxu0 }
  0xd6   : > { %v512_v12 = vmul.f32 0.70710677, %v506_v10  ;;  %v501_v13 = vadd.f32 %v809_v8, %v500_v11  ;;  %v510_v20 = vmul.f32 0.5, %v506_v10 }
  0xd8   : > { %860 = verf.f32 %v512_v12  ;;  %v511_v14 = vmul.f32 0.70710677, %v501_v13  ;;  %v509_v18 = vmul.f32 0.5, %v501_v13 }
  0xda   : > { %862 = verf.f32 %v511_v14 }
  0xe5   : > { %v861_v15 = vpop.eup %860 }
  0xe6   : > { %v516_v17 = vadd.f32 1.0, %v861_v15 }
  0xe7   : > { %v863_v16 = vpop.eup %862 }
  0xe8   : > { %v515_v19 = vadd.f32 1.0, %v863_v16  ;;  %v518_v22 = vmul.f32 %v516_v17, %v510_v20 }
  0xea   : > { %v517_v21 = vmul.f32 %v515_v19, %v509_v18 }
  0xec   : > { %849 = vmatprep.mubr.msk.f32.mxu1 %vm530_vm1, %v517_v21 }
  0xed   : > { %850 = vmatmul.mubr.msk.f32.vlgmr.msra.gmra.mxu1 %vm530_vm1, %v518_v22 }
 0x1ad   : > { %v851_v23 = vpop.f32.mrf.mxu1 }
 0x1ae   : > { %v609_v26 = vadd.f32 %v851_v23, %v812_v24 }
 0x1af   : > { %v603_v25 = vpop.f32.mrf.mxu1 }
 0x1b0   : > { %v604_v27 = vadd.f32 %v812_v24, %v603_v25  ;;  %v613_v30 = vadd.f32 %v609_v26, %v506_v10 }
 0x1b2   : > { %v612_v28 = vadd.f32 %v604_v27, %v501_v13  ;;  %v617_v31 = vsel %vm530_vm1, %v613_v30, 0.0 }
 0x1b4   : > { %v614_v29 = vsel %vm530_vm1, %v612_v28, 0.0 }
 0x1b5   : > { %615 = vadd.xlane.f32.xlu0 %v614_v29 }
 0x1b9   : > { %618 = vadd.xlane.f32.xlu0 %v617_v31 }
 0x23e   : > { %v616_v32 = vpop.xlane.xlu0 %615 }
 0x23f   : > { %v621_v33 = vmul.f32 0.03125, %v616_v32 }
 0x241   : > { %v623_v34 = vsub.f32 %v612_v28, %v621_v33 }
 0x242   : > { %v619_v35 = vpop.xlane.xlu0 %618 }
 0x243   : > { %v622_v36 = vmul.f32 0.03125, %v619_v35  ;;  %v625_v37 = vmul.f32 %v623_v34, %v623_v34 }
 0x245   : > { %v624_v38 = vsub.f32 %v613_v30, %v622_v36  ;;  %v627_v39 = vsel %vm530_vm1, %v625_v37, 0.0 }
 0x246   : > { %628 = vadd.xlane.f32.xlu1 %v627_v39 }
 0x247   : > { %v626_v40 = vmul.f32 %v624_v38, %v624_v38 }
 0x249   : > { %v630_v41 = vsel %vm530_vm1, %v626_v40, 0.0 }
 0x24a   : > { %631 = vadd.xlane.f32.xlu1 %v630_v41 }
 0x2cf   : > { %v629_v42 = vpop.xlane.xlu1 %628 }
 0x2d0   : > { %v633_v43 = vmul.f32 0.03125, %v629_v42 }
 0x2d2   : > { %v635_v44 = vadd.f32 1e-05, %v633_v43 }
 0x2d3   : > { %v632_v45 = vpop.xlane.xlu1 %631 }
 0x2d4   : > { %864 = vrsqrt.f32 %v635_v44  ;;  %v634_v46 = vmul.f32 0.03125, %v632_v45 }
 0x2d6   : > { %v636_v47 = vadd.f32 1e-05, %v634_v46 }
 0x2d8   : > { %866 = vrsqrt.f32 %v636_v47 }
 0x2e1   : > { %v865_v48 = vpop.eup %864 }
 0x2e2   : > { %v639_v50 = vmul.f32 %v865_v48, %v623_v34 }
 0x2e4   : > { %v648_v52 = vmul.f32 %v815_v49, %v639_v50 }
 0x2e5   : > { %v867_v53 = vpop.eup %866 }
 0x2e6   : > { %v657_v54 = vadd.f32 %v816_v51, %v648_v52  ;;  %v640_v55 = vmul.f32 %v867_v53, %v624_v38 }
 0x2e8   : > { %v659_v57 = vmul.f32 5.656854, %v657_v54  ;;  %v649_v58 = vmul.f32 %v815_v49, %v640_v55 }
 0x2ea   : > { %v668_v59 = vadd.f32 %v817_v56, %v659_v57  ;;  %v658_v60 = vadd.f32 %v816_v51, %v649_v58 }
 0x2ec   : > { %670 = vst.msk [vmem:[%s415_s16] sm:$0xff] %vm530_vm1, %v668_v59  ;;  %v660_v61 = vmul.f32 5.656854, %v658_v60 }
 0x2ee   : > { %v669_v62 = vadd.f32 %v817_v56, %v660_v61 }
 0x2f0   : > { %671 = vst.msk [vmem:[%s415_s16 + $0x8] sm:$0xff] %vm530_vm1, %v669_v62 }
 0x2f1 PF: > { %s18_s27 = sadd.s32 1, %s874_s27  }
 0x2f2   : > { %p15_p4 = scmp.ge.s32.totalorder %s18_s27, 4  }
 0x2f4   :  { %17 = sbr.rel (!%p15_p4) target bundleno = 1 (0x1), region = 103 }

// kernel: forward.3
= control target key start
LH: loop header
LB: loop body
LE: loop exit
PB: predicated region body
PF: predicated region fallthrough
CT: control target
= control target key end

     0   :  { %s3331_s0 = inlined_call_operand.vmem [shape: f32[2,17,32], index: 0, kind: input, shape index: {}]   ;;  %s3332_s1 = inlined_call_operand.vmem [shape: f32[2,1,17], index: 1, kind: input, shape index: {}]   ;;  %s3333_s2 = inlined_call_operand.vmem [shape: f32[32,96], index: 2, kind: input, shape index: {}]   ;;  %s3334_s3 = inlined_call_operand.vmem [shape: f32[1,96], index: 3, kind: input, shape index: {}]   ;;  %s3335_s4 = inlined_call_operand.vmem [shape: f32[32,32], index: 4, kind: input, shape index: {}]   ;;  %s3336_s5 = inlined_call_operand.vmem [shape: f32[1,32], index: 5, kind: input, shape index: {}]   ;;  %s3337_s6 = inlined_call_operand.vmem [shape: f32[32,64], index: 6, kind: input, shape index: {}]   ;;  %s3338_s7 = inlined_call_operand.vmem [shape: f32[1,64], index: 7, kind: input, shape index: {}]   ;;  %s3339_s8 = inlined_call_operand.vmem [shape: f32[64,32], index: 8, kind: input, shape index: {}]   ;;  %s3340_s9 = inlined_call_operand.vmem [shape: f32[1,32], index: 9, kind: input, shape index: {}]   ;;  %s3341_s10 = inlined_call_operand.vmem [shape: f32[32,128], index: 10, kind: input, shape index: {}]   ;;  %s3342_s11 = inlined_call_operand.vmem [shape: f32[1,128], index: 11, kind: input, shape index: {}]   ;;  %s3343_s12 = inlined_call_operand.hbm [shape: f32[2,1,128], index: 12, kind: output, shape index: {0}]   ;;  %s3344_s13 = inlined_call_operand.vmem [shape: f32[2,17,17], index: 13, kind: output, shape index: {1}]  }
   0x1   :  { %3345 = sst [smem:[#allocation6_spill]] %s3331_s0 }
   0x2   :  { %3346 = sst [smem:[#allocation7_spill]] %s3332_s1 }
   0x3   :  { %19 = vsyncpa [#allocation3], 0 }
   0x4   :  { %21 = vsyncpa [#allocation3 + $0x1], 0  ;;  %s2742_s25 = smov 0   ;;  %s2744_s26 = smov 0  }
   0x5   :  { %s2746_s27 = smov 0   ;;  %s2748_s28 = smov 0  }
   0x6 LB: > { %s2763_s29 = sadd.s32 4294967295, %s2653_s28   ;;  %s2122_s30 = sadd.s32 4294967294, %s2653_s28   ;;  %s2653_s28 = sphi %s2748_s28, %s3356_s28   ;;  %s2649_s27 = sphi %s2746_s27, %s3355_s27   ;;  %s2645_s26 = sphi %s2744_s26, %s3354_s26   ;;  %s2641_s25 = sphi %s2742_s25, %s3353_s25  }
   0x7   : > { %s2767_s14 = sadd.s32 1, %s2653_s28   ;;  %s296_s15 = sadd.s32 1, %s2649_s27 }
   0x8   : > { %s293_s16 = ssub.s32 %s2653_s28, %s2767_s14  ;;  %p306_p0 = scmp.ne.s32.totalorder %s2649_s27, %s2645_s26 }
   0x9   : > { %p294_p1 = scmp.eq.s32.totalorder %s293_s16, 0  ;;  %p307_p2 = scmp.eq.s32.totalorder %s2763_s29, 1 }
   0xa   : > { %p312_p3 = scmp.ne.s32.totalorder %s2645_s26, %s2641_s25  ;;  %p313_p4 = scmp.eq.s32.totalorder %s2122_s30, 1 }
   0xb   : > { %s2778_s17 = scalar_select %p294_p1, %s2649_s27, %s296_s15  }
   0xc   : > { %p2780_p5 = por %p307_p2, %p306_p0  ;;  %p2784_p6 = por %p313_p4, %p312_p3 }
   0xd   : > { %3347 = sst [smem:[#allocation5_spill]] %s2778_s17  ;;  %p2125_p7 = scmp.ge.s32.totalorder %s2653_s28, 1 }
   0xe   : > { %p401_p8 = scmp.lt.s32.totalorder %s2653_s28, 3 }
  0x10   : > { %p402_p9 = pnand %p2125_p7, %p401_p8 }
  0x11   : > { %p452_p10 = scmp.lt.s32.totalorder (!%p402_p9), %s2763_s29, 1  ;;  %s3350_s0 = sld [smem:[#allocation6_spill]] (!%p402_p9) }
  0x12   : > { %405 = sbr.rel (%p402_p9) target bundleno = 2093 (0x82d), region = 68  ;;  %s2657_s20 = smov (!%p402_p9), 96  }
  0x13   : > { %s2659_s21 = smov (!%p402_p9), 80   ;;  %s2660_s22 = smov (!%p402_p9), 120  }
  0x14   : > { %s2661_s23 = smov (!%p402_p9), 72   ;;  %s2662_s30 = smov (!%p402_p9), 112  }
  0x15   : > { %s2663_s15 = smov (!%p402_p9), 104   ;;  %s3351_s1 = sld [smem:[#allocation7_spill]] (!%p402_p9) }
  0x17   : > { %v472_v0 = vld [vmem:[%s3333_s2 + $0x18] sm:$0xff]  ;;  %v2655_v1 = vmov 0.0   ;;  %v471_v2 = vld [vmem:[%s3333_s2 + $0x10] sm:$0xff]  ;;  %vm2656_vm0 = vmmov 0   ;;  %s2801_s24 = scalar_select %p452_p10, %s2763_s29, 1  ;;  %v470_v3 = vld [vmem:[%s3333_s2 + $0x8] sm:$0xff] }
  0x18   : > { %2274 = vmatprep.subr.mxu0 %v2655_v1  ;;  %2282 = vmatprep.mubr.msk.f32.mxu0 %vm2656_vm0, %v2655_v1  ;;  %v469_v4 = vld [vmem:[%s3333_s2] sm:$0xff]  ;;  %vm480_vm1 = vcmask 261120   ;;  %vm579_vm2 = vcmask 64512   ;;  %vm739_vm3 = vcmask 1040384   ;;  %vm684_vm4 = vcmask 138240  }
  0x19   : > { %2275 = vmatpush3.msra.mxu0 %v472_v0  ;;  %2291 = vmatprep.subr.mxu1 %v2655_v1  ;;  %s2481_s16 = smul.u32 24, %s2801_s24  ;;  %v2128_v8 = vld [vmem:[%s3334_s3] ss:$0 sm:$0xff]  ;;  %vm691_vm5 = vcmask 131072   ;;  %vm1602_vm6 = vcmask 130048   ;;  %vm1606_vm7 = vcmask 195584  }
  0x1a   : > { %2276 = vmatprep.subr.mxu0 %v2655_v1  ;;  %2297 = vmatprep.mubr.msk.f32.mxu1 %vm2656_vm0, %v2655_v1  ;;  %vm1840_vm8 = vcmask 523264  }
  0x1b   : > { %2277 = vmatpush3.msra.mxu0 %v471_v2  ;;  %s456_s17 = scalar_lea.vmem %s3350_s0, %s2481_s16 }
  0x1c   : > { %2278 = vmatprep.subr.mxu0 %v2655_v1  ;;  %v465_v5 = vld [vmem:[%s456_s17] sm:$0xff]  ;;  %v466_v6 = vld [vmem:[%s456_s17 + $0x8] sm:$0xff]  ;;  %v467_v7 = vld [vmem:[%s456_s17 + $0x10] sm:$0x1]  ;;  %s2658_s17 = smov 88  }
  0x1d   : > { %2279 = vmatpush3.msra.mxu0 %v470_v3 }
  0x1e   : > { %2280 = vmatprep.subr.mxu0 %v2655_v1 }
  0x1f   : > { %2281 = vmatpush3.msra.mxu0 %v469_v4 }
  0x20   : > { %2283 = vmatmul.mubr.msk.f32.vlgmr.msra.gmra.mxu0 %vm480_vm1, %v465_v5  ;;  %2306 = vmatprep.subr.mxu0 %v2655_v1 }
  0x21   : > { %2285 = vmatprep.mubr.msk.f32.mxu0 %vm2656_vm0, %v2655_v1 }
  0x24   : > { %2286 = vmatmul.mubr.msk.f32.gmra.mxu0 %vm480_vm1, %v466_v6 }
  0x25   : > { %2288 = vmatprep.mubr.msk.f32.mxu0 %vm2656_vm0, %v2655_v1 }
  0x28   : > { %2289 = vmatmul.mubr.msk.f32.gmra.mxu0 %vm480_vm1, %v467_v7 }
  0x29   : > { %2312 = vmatprep.mubr.msk.f32.mxu0 %vm2656_vm0, %v2655_v1 }
  0xe0   : > { %v556_v9 = vpop.f32.mrf.mxu0 }
  0xe1   : > { %v2834_v10 = vadd.f32 %v2128_v8, %v556_v9 }
  0xe2   : > { %v2284_v11 = vpop.f32.mrf.mxu0 }
  0xe3   : > { %573 = vrot.lane.b32.xlu1 %v2834_v10, %s2657_s20 }
  0xe4   : > { %v561_v12 = vpop.f32.mrf.mxu0 }
  0xe5   : > { %v2841_v17 = vadd.f32 %v2128_v8, %v561_v12 }
  0xe6   : > { %v2287_v13 = vpop.f32.mrf.mxu0 }
  0xe8   : > { %v566_v14 = vpop.f32.mrf.mxu0 }
  0xe9   : > { %v2837_v15 = vadd.f32 %v2128_v8, %v566_v14 }
  0xea   : > { %v2290_v16 = vpop.f32.mrf.mxu0 }
  0xeb   : > { %832 = vrot.lane.b32.xlu1 %v2837_v15, %s2658_s17  ;;  %577 = vrot.lane.b32.xlu0 %v2837_v15, %s2657_s20 }
  0xef   : > { %828 = vrot.lane.b32.xlu1 %v2834_v10, %s2658_s17  ;;  %575 = vrot.lane.b32.xlu0 %v2841_v17, %s2657_s20  ;;  %s2664_s20 = smov 64  }
  0xf3   : > { %1077 = vrot.lane.b32.xlu1 %v2837_v15, %s2659_s21  ;;  %830 = vrot.lane.b32.xlu0 %v2841_v17, %s2658_s17  ;;  %s2665_s17 = smov 56  }
  0xf7   : > { %1075 = vrot.lane.b32.xlu1 %v2841_v17, %s2659_s21  ;;  %822 = vrot.lane.b32.xlu0 %v2834_v10, %s2660_s22 }
  0xfb   : > { %1073 = vrot.lane.b32.xlu1 %v2834_v10, %s2659_s21  ;;  %824 = vrot.lane.b32.xlu0 %v2841_v17, %s2660_s22  ;;  %s3119_s21 = scalar_lea.vmem %s3344_s13, %s2481_s16  ;;  %s2669_s16 = smov 16  }
  0xff   : > { %1322 = vrot.lane.b32.xlu1 %v2837_v15, %s2661_s23  ;;  %826 = vrot.lane.b32.xlu0 %v2837_v15, %s2660_s22  ;;  %s2670_s22 = smov 24  }
 0x103   : > { %1320 = vrot.lane.b32.xlu1 %v2841_v17, %s2661_s23  ;;  %1067 = vrot.lane.b32.xlu0 %v2834_v10, %s2662_s30 }
 0x107   : > { %1318 = vrot.lane.b32.xlu1 %v2834_v10, %s2661_s23  ;;  %1069 = vrot.lane.b32.xlu0 %v2841_v17, %s2662_s30  ;;  %s459_s23 = scalar_lea.vmem %s3351_s1, %s2801_s24  ;;  %s2186_s24 = sshll.u32 %s2763_s29, 4 }
 0x108   : > { %v2940_v43 = vld [vmem:[%s459_s23] ss:$0 sm:$0xff] }
 0x10b   : > { %1314 = vrot.lane.b32.xlu1 %v2841_v17, %s2663_s15  ;;  %1071 = vrot.lane.b32.xlu0 %v2837_v15, %s2662_s30  ;;  %s2666_s30 = smov 48  }
 0x10f   : > { %724 = vrot.lane.b32.xlu1 %v2841_v17, %s2664_s20  ;;  %1312 = vrot.lane.b32.xlu0 %v2834_v10, %s2663_s15 }
 0x113   : > { %970 = vrot.lane.b32.xlu1 %v2841_v17, %s2665_s17  ;;  %722 = vrot.lane.b32.xlu0 %v2834_v10, %s2664_s20 }
 0x117   : > { %968 = vrot.lane.b32.xlu0 %v2834_v10, %s2665_s17 }
 0x11b   : > { %1316 = vrot.lane.b32.xlu0 %v2837_v15, %s2663_s15  ;;  %s2667_s15 = smov 40  }
 0x11f   : > { %726 = vrot.lane.b32.xlu0 %v2837_v15, %s2664_s20  ;;  %s2671_s20 = smov [#allocation2]  }
 0x120   : > { %s2597_s29 = sshll.u32 %s2671_s20, 4  ;;  %s2598_s29 = int_to_ptr.vmem [resolvable:$false] %s2597_s29 }
 0x123   : > { %972 = vrot.lane.b32.xlu0 %v2837_v15, %s2665_s17  ;;  %s2599_s17 = scalar_lea.vmem %s2598_s29, 32 }
 0x155   : > { %v574_v18 = vpop.permute.xlu1 %573 }
 0x15d   : > { %v833_v19 = vpop.permute.xlu1 %832  ;;  %v578_v20 = vpop.permute.xlu0 %577 }
 0x15e   : > { %2292 = vmatpush3.xpose.msk.msra.mxu1 %vm579_vm2, %v578_v20 }
 0x15f   : > { %2293 = vmatprep.subr.mxu1 %v2655_v1 }
 0x161   : > { %v576_v21 = vpop.permute.xlu0 %575  ;;  %v829_v22 = vpop.permute.xlu1 %828 }
 0x162   : > { %2294 = vmatpush3.xpose.msk.msra.mxu1 %vm579_vm2, %v576_v21 }
 0x163   : > { %2295 = vmatprep.subr.mxu1 %v2655_v1 }
 0x165   : > { %v831_v23 = vpop.permute.xlu0 %830  ;;  %v1078_v24 = vpop.permute.xlu1 %1077 }
 0x166   : > { %2296 = vmatpush3.xpose.msk.msra.mxu1 %vm579_vm2, %v574_v18 }
 0x167   : > { %2321 = vmatprep.subr.mxu1 %v2655_v1 }
 0x169   : > { %2298 = vmatmul.mubr.msk.f32.vlgmr.msra.gmra.mxu1 %vm579_vm2, %v2834_v10  ;;  %v823_v25 = vpop.permute.xlu0 %822  ;;  %v1076_v27 = vpop.permute.xlu1 %1075 }
 0x16a   : > { %2322 = vmatpush3.xpose.msk.msra.mxu1 %vm579_vm2, %v833_v19  ;;  %2300 = vmatprep.mubr.msk.f32.mxu1 %vm2656_vm0, %v2655_v1 }
 0x16b   : > { %2323 = vmatprep.subr.mxu1 %v2655_v1 }
 0x16d   : > { %2301 = vmatmul.mubr.msk.f32.gmra.mxu1 %vm579_vm2, %v2841_v17  ;;  %v825_v26 = vpop.permute.xlu0 %824  ;;  %v1074_v29 = vpop.permute.xlu1 %1073 }
 0x16e   : > { %2324 = vmatpush3.xpose.msk.msra.mxu1 %vm579_vm2, %v831_v23  ;;  %2303 = vmatprep.mubr.msk.f32.mxu1 %vm2656_vm0, %v2655_v1 }
 0x16f   : > { %2325 = vmatprep.subr.mxu1 %v2655_v1 }
 0x171   : > { %2304 = vmatmul.mubr.msk.f32.gmra.mxu1 %vm579_vm2, %v2837_v15  ;;  %v827_v28 = vpop.permute.xlu0 %826  ;;  %v1323_v32 = vpop.permute.xlu1 %1322 }
 0x172   : > { %2326 = vmatpush3.xpose.msk.msra.mxu1 %vm579_vm2, %v829_v22  ;;  %2327 = vmatprep.mubr.msk.f32.mxu1 %vm2656_vm0, %v2655_v1 }
 0x173   : > { %2351 = vmatprep.subr.mxu1 %v2655_v1 }
 0x175   : > { %2328 = vmatmul.mubr.msk.f32.vlgmr.msra.gmra.mxu1 %vm579_vm2, %v823_v25  ;;  %v1068_v30 = vpop.permute.xlu0 %1067  ;;  %v1321_v34 = vpop.permute.xlu1 %1320 }
 0x176   : > { %2352 = vmatpush3.xpose.msk.msra.mxu1 %vm579_vm2, %v1078_v24  ;;  %2330 = vmatprep.mubr.msk.f32.mxu1 %vm2656_vm0, %v2655_v1 }
 0x177   : > { %2353 = vmatprep.subr.mxu1 %v2655_v1 }
 0x179   : > { %2331 = vmatmul.mubr.msk.f32.gmra.mxu1 %vm579_vm2, %v825_v26  ;;  %v1070_v31 = vpop.permute.xlu0 %1069  ;;  %v1319_v37 = vpop.permute.xlu1 %1318 }
 0x17a   : > { %2354 = vmatpush3.xpose.msk.msra.mxu1 %vm579_vm2, %v1076_v27  ;;  %2333 = vmatprep.mubr.msk.f32.mxu1 %vm2656_vm0, %v2655_v1 }
 0x17b   : > { %2355 = vmatprep.subr.mxu1 %v2655_v1 }
 0x17d   : > { %2334 = vmatmul.mubr.msk.f32.gmra.mxu1 %vm579_vm2, %v827_v28  ;;  %v1072_v33 = vpop.permute.xlu0 %1071  ;;  %v1315_v39 = vpop.permute.xlu1 %1314 }
 0x17e   : > { %2356 = vmatpush3.xpose.msk.msra.mxu1 %vm579_vm2, %v1074_v29  ;;  %2357 = vmatprep.mubr.msk.f32.mxu1 %vm2656_vm0, %v2655_v1 }
 0x17f   : > { %2381 = vmatprep.subr.mxu1 %v2655_v1 }
 0x181   : > { %2358 = vmatmul.mubr.msk.f32.vlgmr.msra.gmra.mxu1 %vm579_vm2, %v1068_v30  ;;  %v1313_v35 = vpop.permute.xlu0 %1312  ;;  %v725_v42 = vpop.permute.xlu1 %724 }
 0x182   : > { %2382 = vmatpush3.xpose.msk.msra.mxu1 %vm579_vm2, %v1323_v32  ;;  %2360 = vmatprep.mubr.msk.f32.mxu1 %vm2656_vm0, %v2655_v1 }
 0x183   : > { %2383 = vmatprep.subr.mxu1 %v2655_v1 }
 0x185   : > { %2361 = vmatmul.mubr.msk.f32.gmra.mxu1 %vm579_vm2, %v1070_v31  ;;  %v723_v36 = vpop.permute.xlu0 %722 }
 0x186   : > { %2384 = vmatpush3.xpose.msk.msra.mxu1 %vm579_vm2, %v1321_v34  ;;  %2363 = vmatprep.mubr.msk.f32.mxu1 %vm2656_vm0, %v2655_v1 }
 0x187   : > { %2385 = vmatprep.subr.mxu1 %v2655_v1 }
 0x189   : > { %2364 = vmatmul.mubr.msk.f32.gmra.mxu1 %vm579_vm2, %v1072_v33  ;;  %v2917_v38 = vpop.permute.xlu0 %968 }
 0x18a   : > { %2386 = vmatpush3.xpose.msk.msra.mxu1 %vm579_vm2, %v1319_v37  ;;  %2387 = vmatprep.mubr.msk.f32.mxu1 %vm2656_vm0, %v2655_v1 }
 0x18b   : > { %2411 = vmatprep.subr.mxu1 %v2655_v1 }
 0x18d   : > { %2388 = vmatmul.mubr.msk.f32.vlgmr.msra.gmra.mxu1 %vm579_vm2, %v1313_v35  ;;  %v1317_v40 = vpop.permute.xlu0 %1316 }
 0x18e   : > { %2390 = vmatprep.mubr.msk.f32.mxu1 %vm2656_vm0, %v2655_v1 }
 0x191   : > { %2391 = vmatmul.mubr.msk.f32.gmra.mxu1 %vm579_vm2, %v1315_v39  ;;  %v727_v41 = vpop.permute.xlu0 %726 }
 0x192   : > { %2307 = vmatpush3.msk.msra.mxu0 %vm739_vm3, %v727_v41  ;;  %2393 = vmatprep.mubr.msk.f32.mxu1 %vm2656_vm0, %v2655_v1 }
 0x193   : > { %2308 = vmatprep.subr.mxu0 %v2655_v1 }
 0x194   : > { %2309 = vmatpush3.msra.mxu0 %v725_v42 }
 0x195   : > { %2310 = vmatprep.subr.mxu0 %v2655_v1  ;;  %2394 = vmatmul.mubr.msk.f32.gmra.mxu1 %vm579_vm2, %v1317_v40 }
 0x196   : > { %2311 = vmatpush3.msra.mxu0 %v723_v36  ;;  %2419 = vmatprep.mubr.msk.f32.mxu1 %vm2656_vm0, %v2655_v1 }
 0x197   : > { %2336 = vmatprep.subr.mxu0 %v2655_v1 }
 0x229   : > { %v658_v44 = vpop.f32.mrf.mxu1 }
 0x22a   : > { %v672_v45 = vmul.f32 0.35355338, %v658_v44  ;;  %v2999_v44 = vpop.permute.xlu1 %970 }
 0x22b   : > { %v2299_v46 = vpop.f32.mrf.mxu1 }
 0x22c   : > { %v2943_v47 = vadd.f32 %v2940_v43, %v672_v45  ;;  %v3001_v45 = vpop.permute.xlu0 %972 }
 0x22d   : > { %v663_v48 = vpop.f32.mrf.mxu1 }
 0x22e   : > { %v673_v49 = vmul.f32 0.35355338, %v663_v48  ;;  %v685_v50 = vsel %vm684_vm4, %v2943_v47, -inf }
 0x22f   : > { %686 = vmax.xlane.f32.xlu1 %v685_v50  ;;  %v2302_v51 = vpop.f32.mrf.mxu1 }
 0x230   : > { %v2948_v52 = vadd.f32 %v2940_v43, %v673_v49 }
 0x231   : > { %v668_v53 = vpop.f32.mrf.mxu1 }
 0x232   : > { %v674_v54 = vmul.f32 0.35355338, %v668_v53  ;;  %v688_v55 = vsel %vm684_vm4, %v2948_v52, -inf }
 0x233   : > { %689 = vmax.xlane.f32.xlu0 %v688_v55  ;;  %v2305_v56 = vpop.f32.mrf.mxu1 }
 0x234   : > { %v2953_v57 = vadd.f32 %v2940_v43, %v674_v54 }
 0x235   : > { %v912_v58 = vpop.f32.mrf.mxu1 }
 0x236   : > { %v926_v59 = vmul.f32 0.35355338, %v912_v58  ;;  %v692_v60 = vsel %vm691_vm5, %v2953_v57, -inf }
 0x237   : > { %693 = vmax.xlane.f32.xlu0 %v692_v60  ;;  %v2329_v61 = vpop.f32.mrf.mxu1 }
 0x238   : > { %v2958_v62 = vadd.f32 %v2940_v43, %v926_v59 }
 0x239   : > { %v917_v63 = vpop.f32.mrf.mxu1 }
 0x23a   : > { %v927_v0 = vmul.f32 0.35355338, %v917_v63  ;;  %v932_v2 = vsel %vm684_vm4, %v2958_v62, -inf }
 0x23b   : > { %933 = vmax.xlane.f32.xlu1 %v932_v2  ;;  %v2332_v3 = vpop.f32.mrf.mxu1 }
 0x23c   : > { %v930_v4 = vadd.f32 %v2940_v43, %v927_v0 }
 0x23d   : > { %v922_v5 = vpop.f32.mrf.mxu1 }
 0x23e   : > { %v928_v6 = vmul.f32 0.35355338, %v922_v5  ;;  %v935_v7 = vsel %vm684_vm4, %v930_v4, -inf }
 0x23f   : > { %936 = vmax.xlane.f32.xlu0 %v935_v7  ;;  %v2335_v8 = vpop.f32.mrf.mxu1 }
 0x240   : > { %v2965_v9 = vadd.f32 %v2940_v43, %v928_v6 }
 0x241   : > { %v1157_v11 = vpop.f32.mrf.mxu1 }
 0x242   : > { %v1171_v12 = vmul.f32 0.35355338, %v1157_v11  ;;  %v938_v13 = vsel %vm691_vm5, %v2965_v9, -inf }
 0x243   : > { %939 = vmax.xlane.f32.xlu1 %v938_v13  ;;  %v2359_v14 = vpop.f32.mrf.mxu1 }
 0x244   : > { %v2970_v16 = vadd.f32 %v2940_v43, %v1171_v12 }
 0x245   : > { %v1162_v18 = vpop.f32.mrf.mxu1 }
 0x246   : > { %v1172_v19 = vmul.f32 0.35355338, %v1162_v18  ;;  %v1177_v20 = vsel %vm684_vm4, %v2970_v16, -inf }
 0x247   : > { %1178 = vmax.xlane.f32.xlu0 %v1177_v20  ;;  %v2362_v21 = vpop.f32.mrf.mxu1 }
 0x248   : > { %v2975_v22 = vadd.f32 %v2940_v43, %v1172_v19 }
 0x249   : > { %v1167_v23 = vpop.f32.mrf.mxu1 }
 0x24a   : > { %v1173_v24 = vmul.f32 0.35355338, %v1167_v23  ;;  %v1180_v25 = vsel %vm684_vm4, %v2975_v22, -inf }
 0x24b   : > { %1181 = vmax.xlane.f32.xlu1 %v1180_v25  ;;  %v2365_v26 = vpop.f32.mrf.mxu1 }
 0x24c   : > { %v2980_v27 = vadd.f32 %v2940_v43, %v1173_v24 }
 0x24d   : > { %v1402_v28 = vpop.f32.mrf.mxu1 }
 0x24e   : > { %v1416_v29 = vmul.f32 0.35355338, %v1402_v28  ;;  %v1183_v30 = vsel %vm691_vm5, %v2980_v27, -inf }
 0x24f   : > { %1184 = vmax.xlane.f32.xlu0 %v1183_v30  ;;  %v2389_v31 = vpop.f32.mrf.mxu1 }
 0x250   : > { %v2985_v32 = vadd.f32 %v2940_v43, %v1416_v29 }
 0x251   : > { %v1407_v33 = vpop.f32.mrf.mxu1 }
 0x252   : > { %v1417_v34 = vmul.f32 0.35355338, %v1407_v33  ;;  %v1422_v35 = vsel %vm684_vm4, %v2985_v32, -inf }
 0x253   : > { %1423 = vmax.xlane.f32.xlu1 %v1422_v35  ;;  %v2392_v36 = vpop.f32.mrf.mxu1 }
 0x254   : > { %v2990_v37 = vadd.f32 %v2940_v43, %v1417_v34 }
 0x255   : > { %v1412_v39 = vpop.f32.mrf.mxu1 }
 0x256   : > { %v1418_v40 = vmul.f32 0.35355338, %v1412_v39  ;;  %v1425_v35 = vsel %vm684_vm4, %v2990_v37, -inf }
 0x257   : > { %v2395_v41 = vpop.f32.mrf.mxu1 }
 0x258   : > { %v2993_v42 = vadd.f32 %v2940_v43, %v1418_v40 }
 0x25a   : > { %v1428_v34 = vsel %vm691_vm5, %v2993_v42, -inf }
 0x264   : > { %1217 = vrot.lane.b32.xlu1 %v2837_v15, %s2666_s30 }
 0x265   : > { %1215 = vrot.lane.b32.xlu0 %v2841_v17, %s2666_s30 }
 0x2b8   : > { %v687_v46 = vpop.xlane.xlu1 %686 }
 0x2b9   : > { %v695_v48 = vsub.f32 %v2943_v47, %v687_v46 }
 0x2bb   : > { %v698_v49 = vmul.f32 1.442695, %v695_v48 }
 0x2bc   : > { %v690_v50 = vpop.xlane.xlu0 %689 }
 0x2bd   : > { %2537 = vpow2.f32 %v698_v49  ;;  %v696_v43 = vsub.f32 %v2948_v52, %v690_v50 }
 0x2bf   : > { %v700_v51 = vmul.f32 1.442695, %v696_v43 }
 0x2c0   : > { %v694_v53 = vpop.xlane.xlu0 %693 }
 0x2c1   : > { %2539 = vpow2.f32 %v700_v51  ;;  %v697_v54 = vsub.f32 %v2953_v57, %v694_v53 }
 0x2c3   : > { %v702_v55 = vmul.f32 1.442695, %v697_v54 }
 0x2c4   : > { %v934_v3 = vpop.xlane.xlu1 %933 }
 0x2c5   : > { %2541 = vpow2.f32 %v702_v55 }
 0x2c8   : > { %v937_v56 = vpop.xlane.xlu0 %936 }
 0x2c9   : > { %v942_v58 = vsub.f32 %v930_v4, %v937_v56  ;;  %v941_v4 = vsub.f32 %v2958_v62, %v934_v3 }
 0x2ca   : > { %v3006_v59 = vpop.eup %2537 }
 0x2cb   : > { %v946_v60 = vmul.f32 1.442695, %v942_v58  ;;  %v704_v47 = vsel %vm684_vm4, %v3006_v59, 0.0  ;;  %v944_v6 = vmul.f32 1.442695, %v941_v4 }
 0x2cc   : > { %705 = vadd.xlane.f32.xlu0 %v704_v47  ;;  %v940_v5 = vpop.xlane.xlu1 %939 }
 0x2cd   : > { %2543 = vpow2.f32 %v946_v60  ;;  %v943_v7 = vsub.f32 %v2965_v9, %v940_v5 }
 0x2ce   : > { %v3010_v61 = vpop.eup %2539  ;;  %2545 = vpow2.f32 %v944_v6 }
 0x2cf   : > { %v707_v52 = vsel %vm684_vm4, %v3010_v61, 0.0  ;;  %v948_v11 = vmul.f32 1.442695, %v943_v7 }
 0x2d0   : > { %708 = vadd.xlane.f32.xlu1 %v707_v52  ;;  %v1179_v8 = vpop.xlane.xlu0 %1178 }
 0x2d1   : > { %v1186_v12 = vsub.f32 %v2970_v16, %v1179_v8  ;;  %2547 = vpow2.f32 %v948_v11 }
 0x2d2   : > { %v3014_v63 = vpop.eup %2541 }
 0x2d3   : > { %v710_v57 = vsel %vm691_vm5, %v3014_v63, 0.0  ;;  %v1189_v19 = vmul.f32 1.442695, %v1186_v12 }
 0x2d4   : > { %711 = vadd.xlane.f32.xlu0 %v710_v57  ;;  %v1182_v13 = vpop.xlane.xlu1 %1181 }
 0x2d5   : > { %v1187_v18 = vsub.f32 %v2975_v22, %v1182_v13  ;;  %2549 = vpow2.f32 %v1189_v19 }
 0x2d7   : > { %v1191_v21 = vmul.f32 1.442695, %v1187_v18 }
 0x2d8   : > { %v1185_v14 = vpop.xlane.xlu0 %1184 }
 0x2d9   : > { %v1188_v62 = vsub.f32 %v2980_v27, %v1185_v14  ;;  %2551 = vpow2.f32 %v1191_v21 }
 0x2da   : > { %v3018_v0 = vpop.eup %2543 }
 0x2db   : > { %v953_v2 = vsel %vm684_vm4, %v3018_v0, 0.0  ;;  %v1193_v9 = vmul.f32 1.442695, %v1188_v62  ;;  %v3032_v24 = vpop.eup %2545 }
 0x2dc   : > { %954 = vadd.xlane.f32.xlu0 %v953_v2  ;;  %v1424_v20 = vpop.xlane.xlu1 %1423  ;;  %v950_v16 = vsel %vm684_vm4, %v3032_v24, 0.0  ;;  %v1216_v36 = vpop.permute.xlu0 %1215 }
 0x2dd   : > { %v1431_v23 = vsub.f32 %v2985_v32, %v1424_v20  ;;  %2553 = vpow2.f32 %v1193_v9 }
 0x2de   : > { %v3036_v22 = vpop.eup %2547 }
 0x2df   : > { %v956_v25 = vsel %vm691_vm5, %v3036_v22, 0.0 }
 0x2e0   : > { %v1218_v39 = vpop.permute.xlu1 %1217 }
 0x2e1   : > { %1213 = vrot.lane.b32.xlu1 %v2834_v10, %s2666_s30  ;;  %s2668_s30 = smov 8  }
 0x2e2   : > { %v3040_v26 = vpop.eup %2549 }
 0x2e3   : > { %v1195_v28 = vsel %vm684_vm4, %v3040_v26, 0.0 }
 0x2e6   : > { %v3042_v27 = vpop.eup %2551 }
 0x2e7   : > { %v1198_v30 = vsel %vm684_vm4, %v3042_v27, 0.0 }
 0x2ea   : > { %v3046_v29 = vpop.eup %2553 }
 0x2eb   : > { %v1201_v31 = vsel %vm691_vm5, %v3046_v29, 0.0 }
 0x2f2   : > { %1462 = vrot.lane.b32.xlu0 %v2837_v15, %s2667_s15  ;;  %v1434_v15 = vmul.f32 1.442695, %v1431_v23 }
 0x2f4   : > { %2555 = vpow2.f32 %v1434_v15 }
 0x301   : > { %v3052_v32 = vpop.eup %2555 }
 0x302   : > { %v1440_v33 = vsel %vm684_vm4, %v3052_v32, 0.0 }
 0x305   : > { %951 = vadd.xlane.f32.xlu1 %v950_v16 }
 0x309   : > { %957 = vadd.xlane.f32.xlu1 %v956_v25 }
 0x30d   : > { %1196 = vadd.xlane.f32.xlu1 %v1195_v28 }
 0x311   : > { %1199 = vadd.xlane.f32.xlu1 %v1198_v30  ;;  %1202 = vadd.xlane.f32.xlu0 %v1201_v31 }
 0x315   : > { %1441 = vadd.xlane.f32.xlu1 %v1440_v33 }
 0x326   : > { %1460 = vrot.lane.b32.xlu1 %v2841_v17, %s2667_s15 }
 0x327   : > { %1458 = vrot.lane.b32.xlu0 %v2834_v10, %s2667_s15 }
 0x346   : > { %1429 = vmax.xlane.f32.xlu0 %v1428_v34  ;;  %v1613_v34 = vld [vmem:[%s3335_s4 + $0x18] sm:$0xff] }
 0x347   : > { %2412 = vmatpush3.msra.mxu1 %v1613_v34  ;;  %v1826_v34 = vld [vmem:[%s3339_s8 + $0x8] sm:$0xff] }
 0x348   : > { %2413 = vmatprep.subr.mxu1 %v2655_v1 }
 0x34a   : > { %1426 = vmax.xlane.f32.xlu1 %v1425_v35  ;;  %v1612_v35 = vld [vmem:[%s3335_s4 + $0x10] sm:$0xff] }
 0x34b   : > { %2414 = vmatpush3.msra.mxu1 %v1612_v35  ;;  %v1825_v35 = vld [vmem:[%s3339_s8] sm:$0xff] }
 0x34c   : > { %2415 = vmatprep.subr.mxu1 %v2655_v1 }
 0x355   : > { %v706_v40 = vpop.xlane.xlu0 %705 }
 0x356   : > { %2557 = vrcp.f32 %v706_v40 }
 0x359   : > { %v709_v41 = vpop.xlane.xlu1 %708 }
 0x35a   : > { %2559 = vrcp.f32 %v709_v41  ;;  %v1610_v41 = vld [vmem:[%s3335_s4] sm:$0xff] }
 0x35d   : > { %v712_v46 = vpop.xlane.xlu0 %711  ;;  %v1214_v54 = vpop.permute.xlu1 %1213 }
 0x35e   : > { %2561 = vrcp.f32 %v712_v46 }
 0x363   : > { %v2558_v17 = vpop.eup %2557 }
 0x364   : > { %v714_v48 = vmul.f32 %v2558_v17, %v3006_v59 }
 0x365   : > { %v955_v10 = vpop.xlane.xlu0 %954 }
 0x366   : > { %2563 = vrcp.f32 %v955_v10  ;;  %2313 = vmatmul.mubr.msk.f32.vlgmr.msra.gmra.mxu0 %vm684_vm4, %v714_v48 }
 0x367   : > { %v2560_v49 = vpop.eup %2559  ;;  %2337 = vmatpush3.msk.msra.mxu0 %vm739_vm3, %v3001_v45  ;;  %2315 = vmatprep.mubr.msk.f32.mxu0 %vm2656_vm0, %v2655_v1 }
 0x368   : > { %2338 = vmatprep.subr.mxu0 %v2655_v1  ;;  %v716_v50 = vmul.f32 %v2560_v49, %v3010_v61 }
 0x369   : > { %2339 = vmatpush3.msra.mxu0 %v2999_v44  ;;  %v1463_v56 = vpop.permute.xlu0 %1462 }
 0x36a   : > { %2340 = vmatprep.subr.mxu0 %v2655_v1  ;;  %2316 = vmatmul.mubr.msk.f32.gmra.mxu0 %vm684_vm4, %v716_v50 }
 0x36b   : > { %v2562_v43 = vpop.eup %2561  ;;  %2341 = vmatpush3.msra.mxu0 %v2917_v38  ;;  %2318 = vmatprep.mubr.msk.f32.mxu0 %vm2656_vm0, %v2655_v1 }
 0x36c   : > { %v718_v45 = vmul.f32 %v2562_v43, %v3014_v63  ;;  %2366 = vmatprep.subr.mxu0 %v2655_v1 }
 0x36e   : > { %2319 = vmatmul.mubr.msk.f32.gmra.mxu0 %vm684_vm4, %v718_v45 }
 0x36f   : > { %2342 = vmatprep.mubr.msk.f32.mxu0 %vm2656_vm0, %v2655_v1 }
 0x373   : > { %v2564_v44 = vpop.eup %2563 }
 0x374   : > { %v962_v51 = vmul.f32 %v2564_v44, %v3018_v0 }
 0x376   : > { %v966_v53 = vadd.f32 %v962_v51, %v716_v50 }
 0x38e   : > { %v952_v55 = vpop.xlane.xlu1 %951 }
 0x38f   : > { %2565 = vrcp.f32 %v952_v55 }
 0x392   : > { %v958_v38 = vpop.xlane.xlu1 %957 }
 0x393   : > { %2567 = vrcp.f32 %v958_v38 }
 0x396   : > { %v1197_v58 = vpop.xlane.xlu1 %1196 }
 0x397   : > { %2569 = vrcp.f32 %v1197_v58 }
 0x39a   : > { %v1200_v59 = vpop.xlane.xlu1 %1199  ;;  %v1203_v60 = vpop.xlane.xlu0 %1202 }
 0x39b   : > { %2571 = vrcp.f32 %v1200_v59 }
 0x39c   : > { %v2566_v47 = vpop.eup %2565  ;;  %2573 = vrcp.f32 %v1203_v60 }
 0x39d   : > { %v960_v61 = vmul.f32 %v2566_v47, %v3032_v24 }
 0x39e   : > { %v1442_v52 = vpop.xlane.xlu1 %1441  ;;  %v1459_v20 = vpop.permute.xlu0 %1458 }
 0x39f   : > { %2575 = vrcp.f32 %v1442_v52  ;;  %2343 = vmatmul.mubr.msk.f32.vlgmr.msra.gmra.mxu0 %vm684_vm4, %v960_v61  ;;  %v965_v8 = vadd.f32 %v960_v61, %v714_v48 }
 0x3a0   : > { %v2568_v63 = vpop.eup %2567  ;;  %2367 = vmatpush3.msk.msra.mxu0 %vm739_vm3, %v1218_v39  ;;  %2345 = vmatprep.mubr.msk.f32.mxu0 %vm2656_vm0, %v2655_v1  ;;  %v1611_v39 = vld [vmem:[%s3335_s4 + $0x8] sm:$0xff] }
 0x3a1   : > { %2368 = vmatprep.subr.mxu0 %v2655_v1  ;;  %v964_v57 = vmul.f32 %v2568_v63, %v3036_v22  ;;  %2416 = vmatpush3.msra.mxu1 %v1611_v39  ;;  %v1713_v63 = vld [vmem:[%s3337_s6 + $0x18] sm:$0xff] }
 0x3a2   : > { %2369 = vmatpush3.msra.mxu0 %v1216_v36  ;;  %v1461_v19 = vpop.permute.xlu1 %1460  ;;  %2417 = vmatprep.subr.mxu1 %v2655_v1 }
 0x3a3   : > { %2370 = vmatprep.subr.mxu0 %v2655_v1  ;;  %2346 = vmatmul.mubr.msk.f32.gmra.mxu0 %vm684_vm4, %v962_v51  ;;  %v967_v0 = vadd.f32 %v964_v57, %v718_v45 }
 0x3a4   : > { %2371 = vmatpush3.msra.mxu0 %v1214_v54  ;;  %2348 = vmatprep.mubr.msk.f32.mxu0 %vm2656_vm0, %v2655_v1  ;;  %v2570_v2 = vpop.eup %2569 }
 0x3a5   : > { %2396 = vmatprep.subr.mxu0 %v2655_v1  ;;  %v1205_v5 = vmul.f32 %v2570_v2, %v3040_v26  ;;  %2418 = vmatpush3.msra.mxu1 %v1610_v41 }
 0x3a6   : > { %2445 = vmatprep.subr.mxu1 %v2655_v1 }
 0x3a7   : > { %2349 = vmatmul.mubr.msk.f32.gmra.mxu0 %vm684_vm4, %v964_v57  ;;  %v1210_v14 = vadd.f32 %v1205_v5, %v965_v8  ;;  %v1712_v57 = vld [vmem:[%s3337_s6 + $0x10] sm:$0xff]  ;;  %v1710_v8 = vld [vmem:[%s3337_s6] sm:$0xff] }
 0x3a8   : > { %v2572_v3 = vpop.eup %2571  ;;  %2372 = vmatprep.mubr.msk.f32.mxu0 %vm2656_vm0, %v2655_v1 }
 0x3a9   : > { %v2574_v4 = vpop.eup %2573  ;;  %v1207_v6 = vmul.f32 %v2572_v3, %v3042_v27 }
 0x3aa   : > { %v1209_v7 = vmul.f32 %v2574_v4, %v3046_v29 }
 0x3ab   : > { %2373 = vmatmul.mubr.msk.f32.vlgmr.msra.gmra.mxu0 %vm684_vm4, %v1205_v5  ;;  %v3103_v11 = vadd.f32 %v1207_v6, %v966_v53 }
 0x3ac   : > { %v2576_v12 = vpop.eup %2575  ;;  %2397 = vmatpush3.msk.msra.mxu0 %vm739_vm3, %v1463_v56  ;;  %2375 = vmatprep.mubr.msk.f32.mxu0 %vm2656_vm0, %v2655_v1  ;;  %v3108_v13 = vadd.f32 %v1209_v7, %v967_v0  ;;  %v1711_v0 = vld [vmem:[%s3337_s6 + $0x8] sm:$0xff] }
 0x3ad   : > { %v1450_v18 = vmul.f32 %v2576_v12, %v3052_v32  ;;  %2398 = vmatprep.subr.mxu0 %v2655_v1 }
 0x3ae   : > { %2399 = vmatpush3.msra.mxu0 %v1461_v19 }
 0x3af   : > { %v1455_v62 = vadd.f32 %v1450_v18, %v1210_v14  ;;  %2400 = vmatprep.subr.mxu0 %v2655_v1  ;;  %2376 = vmatmul.mubr.msk.f32.gmra.mxu0 %vm684_vm4, %v1207_v6 }
 0x3b0   : > { %2401 = vmatpush3.msra.mxu0 %v1459_v20  ;;  %2378 = vmatprep.mubr.msk.f32.mxu0 %vm2656_vm0, %v2655_v1 }
 0x3b1   : > { %v1557_v21 = vmul.f32 0.25, %v1455_v62  ;;  %2428 = vmatprep.subr.mxu0 %v2655_v1 }
 0x3b3   : > { %1560 = vst.msk [vmem:[%s3119_s21] sm:$0xff] %vm684_vm4, %v1557_v21  ;;  %2379 = vmatmul.mubr.msk.f32.gmra.mxu0 %vm684_vm4, %v1209_v7 }
 0x3b4   : > { %2402 = vmatprep.mubr.msk.f32.mxu0 %vm2656_vm0, %v2655_v1 }
 0x3b7   : > { %2403 = vmatmul.mubr.msk.f32.vlgmr.msra.gmra.mxu0 %vm684_vm4, %v1450_v18  ;;  %v2173_v18 = vld [vmem:[%s3336_s5] ss:$0 sm:$0xff] }
 0x3b8   : > { %2405 = vmatprep.mubr.msk.f32.mxu0 %vm2656_vm0, %v2655_v1  ;;  %2429 = vmatpush3.msra.mxu0 %v1713_v63 }
 0x3b9   : > { %2430 = vmatprep.subr.mxu0 %v2655_v1 }
 0x3ba   : > { %2431 = vmatpush3.msra.mxu0 %v1712_v57 }
 0x3bb   : > { %2432 = vmatprep.subr.mxu0 %v2655_v1 }
 0x3bc   : > { %2433 = vmatpush3.msra.mxu0 %v1711_v0  ;;  %v2181_v0 = vld [vmem:[%s3340_s9] ss:$0 sm:$0xff] }
 0x3bd   : > { %2434 = vmatprep.subr.mxu0 %v2655_v1 }
 0x3be   : > { %2435 = vmatpush3.msra.mxu0 %v1710_v8 }
 0x3bf   : > { %2470 = vmatprep.subr.mxu0 %v2655_v1 }
 0x3cf   : > { %v1430_v9 = vpop.xlane.xlu0 %1429 }
 0x3d0   : > { %v1433_v23 = vsub.f32 %v2993_v42, %v1430_v9 }
 0x3d2   : > { %v1438_v15 = vmul.f32 1.442695, %v1433_v23 }
 0x3d3   : > { %v1427_v24 = vpop.xlane.xlu1 %1426 }
 0x3d4   : > { %2577 = vpow2.f32 %v1438_v15  ;;  %v1432_v16 = vsub.f32 %v2990_v37, %v1427_v24 }
 0x3d6   : > { %v1436_v22 = vmul.f32 1.442695, %v1432_v16 }
 0x3d8   : > { %2579 = vpow2.f32 %v1436_v22 }
 0x3e1   : > { %v2578_v25 = vpop.eup %2577 }
 0x3e2   : > { %v1446_v26 = vsel %vm691_vm5, %v2578_v25, 0.0 }
 0x3e3   : > { %1447 = vadd.xlane.f32.xlu1 %v1446_v26 }
 0x3e5   : > { %v2580_v27 = vpop.eup %2579 }
 0x3e6   : > { %v1443_v28 = vsel %vm684_vm4, %v2580_v27, 0.0 }
 0x3e7   : > { %1444 = vadd.xlane.f32.xlu0 %v1443_v28 }
 0x426   : > { %v3136_v29 = vpop.f32.mrf.mxu0 }
 0x428   : > { %v2314_v30 = vpop.f32.mrf.mxu0 }
 0x429   : > { %v1832_v30 = vld [vmem:[%s3339_s8 + $0x38] sm:$0xff] }
 0x42a   : > { %v3138_v31 = vpop.f32.mrf.mxu0 }
 0x42c   : > { %v2317_v42 = vpop.f32.mrf.mxu0 }
 0x42d   : > { %v1830_v42 = vld [vmem:[%s3339_s8 + $0x28] sm:$0xff] }
 0x42e   : > { %v3140_v32 = vpop.f32.mrf.mxu0 }
 0x430   : > { %v2320_v33 = vpop.f32.mrf.mxu0 }
 0x431   : > { %v1828_v33 = vld [vmem:[%s3339_s8 + $0x18] sm:$0xff] }
 0x45f   : > { %v1053_v37 = vpop.f32.mrf.mxu0 }
 0x460   : > { %1566 = vrot.lane.b32.xlu0 %v1053_v37, %s2668_s30  ;;  %v1827_v37 = vld [vmem:[%s3339_s8 + $0x10] sm:$0xff] }
 0x461   : > { %v2344_v36 = vpop.f32.mrf.mxu0 }
 0x462   : > { %v2177_v36 = vld [vmem:[%s3338_s7] ss:$0 sm:$0xff] }
 0x463   : > { %v1058_v40 = vpop.f32.mrf.mxu0 }
 0x464   : > { %1568 = vrot.lane.b32.xlu0 %v1058_v40, %s2668_s30 }
 0x465   : > { %v2347_v46 = vpop.f32.mrf.mxu0 }
 0x467   : > { %v1063_v17 = vpop.f32.mrf.mxu0 }
 0x469   : > { %v2350_v48 = vpop.f32.mrf.mxu0 }
 0x46b   : > { %v1298_v10 = vpop.f32.mrf.mxu0 }
 0x46c   : > { %v1448_v49 = vpop.xlane.xlu1 %1447  ;;  %1578 = vrot.lane.b32.xlu1 %v1298_v10, %s2669_s16 }
 0x46d   : > { %2581 = vrcp.f32 %v1448_v49  ;;  %v2374_v50 = vpop.f32.mrf.mxu0 }
 0x46f   : > { %v1303_v43 = vpop.f32.mrf.mxu0 }
 0x470   : > { %v1445_v45 = vpop.xlane.xlu0 %1444 }
 0x471   : > { %2583 = vrcp.f32 %v1445_v45  ;;  %v2377_v44 = vpop.f32.mrf.mxu0 }
 0x473   : > { %v1308_v51 = vpop.f32.mrf.mxu0 }
 0x475   : > { %v2380_v53 = vpop.f32.mrf.mxu0 }
 0x477   : > { %v1543_v54 = vpop.f32.mrf.mxu0 }
 0x478   : > { %1590 = vrot.lane.b32.xlu1 %v1543_v54, %s2670_s22  ;;  %v1936_v54 = vld [vmem:[%s3341_s10 + $0x18] sm:$0xff] }
 0x479   : > { %v2404_v55 = vpop.f32.mrf.mxu0 }
 0x47a   : > { %v2582_v38 = vpop.eup %2581  ;;  %v1935_v55 = vld [vmem:[%s3341_s10 + $0x10] sm:$0xff] }
 0x47b   : > { %v1454_v56 = vmul.f32 %v2582_v38, %v2578_v25  ;;  %v1934_v38 = vld [vmem:[%s3341_s10 + $0x8] sm:$0xff] }
 0x47c   : > { %1580 = vrot.lane.b32.xlu1 %v1303_v43, %s2669_s16 }
 0x47d   : > { %v1457_v58 = vadd.f32 %v1454_v56, %v3108_v13 }
 0x47e   : > { %v2584_v59 = vpop.eup %2583 }
 0x47f   : > { %v1452_v60 = vmul.f32 %v2584_v59, %v2580_v27  ;;  %v1559_v47 = vmul.f32 0.25, %v1457_v58 }
 0x480   : > { %1570 = vrot.lane.b32.xlu1 %v1063_v17, %s2668_s30 }
 0x481   : > { %v1456_v61 = vadd.f32 %v1452_v60, %v3103_v11  ;;  %2406 = vmatmul.mubr.msk.f32.gmra.mxu0 %vm684_vm4, %v1452_v60  ;;  %1562 = vst.msk [vmem:[%s3119_s21 + $0x10] sm:$0x1] %vm691_vm5, %v1559_v47 }
 0x482   : > { %2408 = vmatprep.mubr.msk.f32.mxu0 %vm2656_vm0, %v2655_v1 }
 0x483   : > { %v1558_v52 = vmul.f32 0.25, %v1456_v61 }
 0x485   : > { %1561 = vst.msk [vmem:[%s3119_s21 + $0x8] sm:$0xff] %vm684_vm4, %v1558_v52  ;;  %2409 = vmatmul.mubr.msk.f32.gmra.mxu0 %vm684_vm4, %v1454_v56  ;;  %v1933_v56 = vld [vmem:[%s3341_s10] sm:$0xff] }
 0x486   : > { %2436 = vmatprep.mubr.msk.f32.mxu0 %vm2656_vm0, %v2655_v1 }
 0x4d2   : > { %v1567_v2 = vpop.permute.xlu0 %1566 }
 0x4d3   : > { %v1599_v4 = vsel %vm579_vm2, %v3136_v29, %v1567_v2 }
 0x4d6   : > { %v1569_v9 = vpop.permute.xlu0 %1568 }
 0x4d7   : > { %v1600_v23 = vsel %vm579_vm2, %v3138_v31, %v1569_v9  ;;  %v1831_v31 = vld [vmem:[%s3339_s8 + $0x30] sm:$0xff] }
 0x4de   : > { %v1579_v3 = vpop.permute.xlu1 %1578 }
 0x4df   : > { %v1603_v5 = vsel %vm1602_vm6, %v1599_v4, %v1579_v3 }
 0x4ea   : > { %v1591_v6 = vpop.permute.xlu1 %1590 }
 0x4eb   : > { %v1607_v7 = vsel %vm1606_vm7, %v1603_v5, %v1591_v6 }
 0x4ec   : > { %2420 = vmatmul.mubr.msk.f32.vlgmr.msra.gmra.mxu1 %vm480_vm1, %v1607_v7 }
 0x4ed   : > { %2422 = vmatprep.mubr.msk.f32.mxu1 %vm2656_vm0, %v2655_v1  ;;  %2446 = vmatpush3.msra.mxu1 %v1832_v30 }
 0x4ee   : > { %v1581_v20 = vpop.permute.xlu1 %1580  ;;  %2447 = vmatprep.subr.mxu1 %v2655_v1 }
 0x4ef   : > { %v1604_v15 = vsel %vm1602_vm6, %v1600_v23, %v1581_v20  ;;  %2448 = vmatpush3.msra.mxu1 %v1831_v31 }
 0x4f0   : > { %2449 = vmatprep.subr.mxu1 %v2655_v1 }
 0x4f1   : > { %2450 = vmatpush3.msra.mxu1 %v1830_v42 }
 0x4f2   : > { %v1571_v24 = vpop.permute.xlu1 %1570  ;;  %2451 = vmatprep.subr.mxu1 %v2655_v1 }
 0x4f3   : > { %v1601_v25 = vsel %vm579_vm2, %v3140_v32, %v1571_v24  ;;  %v1829_v32 = vld [vmem:[%s3339_s8 + $0x20] sm:$0xff] }
 0x4f4   : > { %2452 = vmatpush3.msra.mxu1 %v1829_v32 }
 0x4f5   : > { %2453 = vmatprep.subr.mxu1 %v2655_v1 }
 0x4f6   : > { %2454 = vmatpush3.msra.mxu1 %v1828_v33 }
 0x4f7   : > { %2455 = vmatprep.subr.mxu1 %v2655_v1 }
 0x4f8   : > { %2456 = vmatpush3.msra.mxu1 %v1827_v37 }
 0x4f9   : > { %2457 = vmatprep.subr.mxu1 %v2655_v1 }
 0x4fa   : > { %2458 = vmatpush3.msra.mxu1 %v1826_v34 }
 0x4fb   : > { %2459 = vmatprep.subr.mxu1 %v2655_v1 }
 0x4fc   : > { %2460 = vmatpush3.msra.mxu1 %v1825_v35 }
 0x541   : > { %v1548_v11 = vpop.f32.mrf.mxu0 }
 0x542   : > { %1592 = vrot.lane.b32.xlu0 %v1548_v11, %s2670_s22 }
 0x543   : > { %v2407_v12 = vpop.f32.mrf.mxu0 }
 0x545   : > { %v1553_v13 = vpop.f32.mrf.mxu0 }
 0x546   : > { %1582 = vrot.lane.b32.xlu0 %v1308_v51, %s2669_s16  ;;  %1594 = vrot.lane.b32.xlu1 %v1553_v13, %s2670_s22  ;;  %s443_s22 = sand.u32 1, %s2645_s26   ;;  %s3296_s16 = scalar_lea.hbm %s3343_s12, %s2186_s24 }
 0x547   : > { %v2410_v14 = vpop.f32.mrf.mxu0  ;;  %s444_s21 = scalar_lea.vmem [#allocation2], %s443_s22  ;;  %s2013_s0 = scalar_lea.sflag [#allocation3], %s443_s22 }
 0x548   : > { %s2030_s23 = sshll.u32 %s444_s21, 4  ;;  %s2031_s23 = int_to_ptr.vmem [resolvable:$true] %s2030_s23 }
 0x549   : > { %s2593_s1 = scalar_lea.vmem %s2031_s23, 16  ;;  %p2600_p0 = scmp.lt.s32.totalorder %s2031_s23, %s2598_s29 }
 0x54a   : > { %p2594_p11 = scmp.ne.s32.totalorder %s2031_s23, %s2593_s1  ;;  %p2601_p1 = scmp.lt.s32.totalorder %s2599_s17, %s2593_s1 }
 0x54c   : > { %p2595_p12 = pnand %p2594_p11, %p2780_p5  ;;  %p2602_p2 = por %p2601_p1, %p2600_p0 }
 0x54e   : > { %p2596_p13 = pneg %p2595_p12 }
 0x550   : > { %p2603_p3 = pnand %p2602_p2, %p2596_p13 }
 0x5ac   : > { %v1696_v19 = vpop.f32.mrf.mxu1 }
 0x5ad   : > { %v1697_v62 = vadd.f32 %v2173_v18, %v1696_v19 }
 0x5ae   : > { %v2421_v21 = vpop.f32.mrf.mxu1 }
 0x5af   : > { %2437 = vmatmul.mubr.msk.f32.vlgmr.msra.gmra.mxu0 %vm480_vm1, %v1697_v62 }
 0x5b0   : > { %2439 = vmatprep.mubr.msk.f32.mxu0 %vm2656_vm0, %v2655_v1  ;;  %2471 = vmatpush3.msra.mxu0 %v1936_v54 }
 0x5b1   : > { %2472 = vmatprep.subr.mxu0 %v2655_v1 }
 0x5b2   : > { %2473 = vmatpush3.msra.mxu0 %v1935_v55 }
 0x5b3   : > { %2474 = vmatprep.subr.mxu0 %v2655_v1 }
 0x5b4   : > { %v1593_v16 = vpop.permute.xlu0 %1592  ;;  %2475 = vmatpush3.msra.mxu0 %v1934_v38 }
 0x5b5   : > { %v1608_v22 = vsel %vm1606_vm7, %v1604_v15, %v1593_v16  ;;  %2476 = vmatprep.subr.mxu0 %v2655_v1  ;;  %v1937_v16 = vld [vmem:[%s3342_s11] sm:$0x1] }
 0x5b6   : > { %2423 = vmatmul.mubr.msk.f32.gmra.mxu1 %vm480_vm1, %v1608_v22  ;;  %2477 = vmatpush3.msra.mxu0 %v1933_v56 }
 0x5b7   : > { %2425 = vmatprep.mubr.msk.f32.mxu1 %vm2656_vm0, %v2655_v1 }
 0x5b8   : > { %v1583_v26 = vpop.permute.xlu0 %1582  ;;  %v1595_v27 = vpop.permute.xlu1 %1594 }
 0x5b9   : > { %v1605_v28 = vsel %vm1602_vm6, %v1601_v25, %v1583_v26 }
 0x5ba   : > { %v1609_v29 = vsel %vm1606_vm7, %v1605_v28, %v1595_v27 }
 0x5bb   : > { %2426 = vmatmul.mubr.msk.f32.gmra.mxu1 %vm480_vm1, %v1609_v29 }
 0x5bc   : > { %2461 = vmatprep.mubr.msk.f32.mxu1 %vm2656_vm0, %v2655_v1 }
 0x66f   : > { %v1796_v39 = vpop.f32.mrf.mxu0 }
 0x670   : > { %v1797_v40 = vadd.f32 %v2177_v36, %v1796_v39 }
 0x671   : > { %v2438_v41 = vpop.f32.mrf.mxu0 }
 0x672   : > { %v1813_v46 = vmul.f32 0.70710677, %v1797_v40  ;;  %v1810_v44 = vmul.f32 0.5, %v1797_v40 }
 0x674   : > { %2585 = verf.f32 %v1813_v46 }
 0x676   : > { %v1701_v17 = vpop.f32.mrf.mxu1 }
 0x677   : > { %v1702_v48 = vadd.f32 %v2173_v18, %v1701_v17 }
 0x678   : > { %v2424_v10 = vpop.f32.mrf.mxu1 }
 0x679   : > { %2440 = vmatmul.mubr.msk.f32.gmra.mxu0 %vm480_vm1, %v1702_v48 }
 0x67a   : > { %2442 = vmatprep.mubr.msk.f32.mxu0 %vm2656_vm0, %v2655_v1 }
 0x67b   : > { %v1706_v49 = vpop.f32.mrf.mxu1 }
 0x67c   : > { %v1707_v50 = vadd.f32 %v2173_v18, %v1706_v49 }
 0x67d   : > { %v2427_v43 = vpop.f32.mrf.mxu1 }
 0x67e   : > { %2443 = vmatmul.mubr.msk.f32.gmra.mxu0 %vm480_vm1, %v1707_v50 }
 0x67f   : > { %2478 = vmatprep.mubr.msk.f32.mxu0 %vm2656_vm0, %v2655_v1 }
 0x681   : > { %v2586_v45 = vpop.eup %2585 }
 0x682   : > { %v1819_v51 = vadd.f32 1.0, %v2586_v45 }
 0x684   : > { %v1822_v53 = vmul.f32 %v1819_v51, %v1810_v44 }
 0x686   : > { %2462 = vmatmul.mubr.msk.f32.vlgmr.msra.gmra.mxu1 %vm1840_vm8, %v1822_v53 }
 0x687   : > { %2464 = vmatprep.mubr.msk.f32.mxu1 %vm2656_vm0, %v2655_v1 }
 0x739   : > { %v1801_v58 = vpop.f32.mrf.mxu0 }
 0x73a   : > { %v1802_v59 = vadd.f32 %v2177_v36, %v1801_v58 }
 0x73b   : > { %v2441_v60 = vpop.f32.mrf.mxu0 }
 0x73c   : > { %v1814_v47 = vmul.f32 0.70710677, %v1802_v59  ;;  %v1811_v7 = vmul.f32 0.5, %v1802_v59 }
 0x73e   : > { %2587 = verf.f32 %v1814_v47  ;;  %v1806_v61 = vpop.f32.mrf.mxu0 }
 0x73f   : > { %v1807_v52 = vadd.f32 %v2177_v36, %v1806_v61 }
 0x740   : > { %v2444_v63 = vpop.f32.mrf.mxu0 }
 0x741   : > { %v1815_v57 = vmul.f32 0.70710677, %v1807_v52  ;;  %v1812_v13 = vmul.f32 0.5, %v1807_v52 }
 0x743   : > { %2589 = verf.f32 %v1815_v57 }
 0x746   : > { %v1916_v2 = vpop.f32.mrf.mxu1 }
 0x747   : > { %v1917_v3 = vadd.f32 %v2181_v0, %v1916_v2 }
 0x748   : > { %v2463_v4 = vpop.f32.mrf.mxu1 }
 0x749   : > { %v1929_v5 = vmul.f32 0.70710677, %v1917_v3  ;;  %v1928_v62 = vmul.f32 0.5, %v1917_v3 }
 0x74b   : > { %v2588_v6 = vpop.eup %2587  ;;  %2591 = verf.f32 %v1929_v5 }
 0x74c   : > { %v1820_v8 = vadd.f32 1.0, %v2588_v6 }
 0x74e   : > { %v1823_v11 = vmul.f32 %v1820_v8, %v1811_v7 }
 0x750   : > { %v2590_v12 = vpop.eup %2589  ;;  %2465 = vmatmul.mubr.msk.f32.gmra.mxu1 %vm1840_vm8, %v1823_v11 }
 0x751   : > { %v1821_v14 = vadd.f32 1.0, %v2590_v12  ;;  %2467 = vmatprep.mubr.msk.f32.mxu1 %vm2656_vm0, %v2655_v1 }
 0x753   : > { %v1824_v18 = vmul.f32 %v1821_v14, %v1812_v13 }
 0x755   : > { %2468 = vmatmul.mubr.msk.f32.gmra.mxu1 %vm1840_vm8, %v1824_v18 }
 0x758   : > { %v2592_v19 = vpop.eup %2591 }
 0x759   : > { %v1931_v20 = vadd.f32 1.0, %v2592_v19 }
 0x75b   : > { %v1932_v21 = vmul.f32 %v1931_v20, %v1928_v62 }
 0x75d   : > { %2479 = vmatmul.mubr.msk.f32.vlgmr.msra.gmra.mxu0 %vm480_vm1, %v1932_v21 }
 0x810   : > { %v1921_v9 = vpop.f32.mrf.mxu1 }
 0x812   : > { %v2466_v23 = vpop.f32.mrf.mxu1 }
 0x815   : > { %v1925_v15 = vpop.f32.mrf.mxu1 }
 0x817   : > { %v2469_v24 = vpop.f32.mrf.mxu1 }
 0x81d   : > { %v2007_v1 = vpop.f32.mrf.mxu0 }
 0x81e   : > { %v2008_v22 = vadd.f32 %v2007_v1, %v1937_v16 }
 0x81f   : > { %v2480_v25 = vpop.f32.mrf.mxu0 }
 0x820   : > { %2011 = vst [vmem:[%s444_s21] sm:$0x1] %v2008_v22 }
 0x821   : > { %2606 = shalt.err (!%p2603_p3)
}
 0x822   : > { %s2607_s24 = scalar_lea.hbm %s3296_s16, 16  ;;  %s2611_s15 = scalar_lea.hbm %s3343_s12, 32 }
 0x823   : > { %p2608_p4 = scmp.ne.s32.totalorder %s3296_s16, %s2607_s24  ;;  %p2612_p9 = scmp.lt.s32.totalorder %s3296_s16, %s3343_s12 }
 0x824   : > { %p2613_p10 = scmp.lt.s32.totalorder %s2611_s15, %s2607_s24 }
 0x825   : > { %p2609_p7 = pnand %p2608_p4, %p2780_p5 }
 0x826   : > { %p2614_p11 = por %p2613_p10, %p2612_p9 }
 0x827   : > { %p2610_p8 = pneg %p2609_p7 }
 0x829   : > { %p2615_p12 = pnand %p2614_p11, %p2610_p8 }
 0x82b   : > { %2618 = shalt.err (!%p2615_p12)
}
 0x82c   : > { %2482 = dma.vmem_to_hbm [thread:$0]  (%p2780_p5), %s2031_s23, 16, %s3296_s16, %s2013_s0  }
 0x82d PF: > { %p2488_p13 = scmp.ge.s32.totalorder %s2653_s28, 2  ;;  %s2045_s1 = sand.u32 1, %s2641_s25  }
 0x82e   : > { %s2046_s29 = scalar_lea.sflag [#allocation3], %s2045_s1 }
 0x82f   : > { %p2485_p0 = pnand %p2488_p13, %p2784_p6 }
 0x831   : > { %p2486_p1 = pneg %p2485_p0 }
 0x833   : > { %2636 = dma.done.wait (%p2486_p1), %s2046_s29, 16  }
 0x834   : > { %2638 = vsyncadd (%p2486_p1), %s2046_s29, 4294967280  ;;  %s3352_s17 = sld [smem:[#allocation5_spill]]  ;;  %p24_p2 = scmp.ge.s32.totalorder %s2767_s14, 4  }
 0x835   : > { %s3353_s25 = smov %s2645_s26  ;;  %s3354_s26 = smov %s2649_s27 }
 0x836   : > { %s3356_s28 = smov %s2767_s14  ;;  %26 = sbr.rel (!%p24_p2) target bundleno = 6 (0x6), region = 118 }
 0x83a   : > { %s3355_s27 = smov %s3352_s17 }
 0x83b   :  { %2058 = vsyncpa [#allocation3], 1 }
 0x83c   :  { %2060 = vsyncpa [#allocation3 + $0x1], 1 }

</bundles_post_ra>
